<compile_context>
chip_gen: v6e
topology: v6e:2x2x1
jax: 0.10.0
libtpu: 0.0.40
codegen_flags: <defaults>
</compile_context>

<pallas_src>
import functools

import jax
import jax.numpy as jnp
import numpy as np
from jax.experimental import pallas as pl
from jax.experimental.pallas import tpu as pltpu

_VMEM_CAP_BYTES = 48 * 1024 * 1024  # stay well under v7x's 64 MiB/TC VMEM


def _cdiv(a, b):
    return (a + b - 1) // b


def _round_up(x, m):
    return _cdiv(x, m) * m


def _make_kernel(k: int, hidden_pad: int, time_block: int, batch_block: int,
                 compute_dtype):
    """Per-grid-step kernel body: runs `time_block` recurrence steps."""
    H = hidden_pad
    Tc = time_block
    Bblk = batch_block
    hist = (k - 1) * H

    def kernel(x_ref, wxh_ref, whh_ref, b_ref, wmo_ref, out_ref,
               xproj_ref, hstage_ref):
        # hstage holds hidden states in time-increasing order:
        #   slot m  <->  h at absolute time (block_start - (k-1) + m),
        # so slots [0, k-1) are the carried history (seeds) and slots
        # [k-1, Tc+k-1) are written by this block.  Reset the seeds at the
        # start of each batch block's time sweep (time axis is grid dim 1).
        @pl.when(pl.program_id(1) == 0)
        def _():
            hstage_ref[pl.ds(0, k - 1)] = jnp.zeros((k - 1, Bblk, H),
                                                    compute_dtype)

        # (1) Hoisted input projection: ONE big-M GEMM (M = Tc*Bblk) for the
        # whole time block; the bias broadcast happens here, once, outside
        # the serialized recurrence.
        x_flat = x_ref[...].reshape(Tc * Bblk, -1)
        xp = jnp.dot(x_flat, wxh_ref[...], preferred_element_type=jnp.float32)
        xproj_ref[...] = (xp + b_ref[...]).reshape(Tc, Bblk, H)

        # (2) Serialized recurrence: per step only
        #       h_t = tanh(dot(h_cat, Whh^T) + xproj[i])
        # stays on the critical path.  h_cat (most-recent hidden first) is
        # carried in compute_dtype (bf16) so no per-step history re-cast.
        # Possible further refinement: hold Whh^T in the MXU weight registers
        # across the Tc steps via pltpu.matmul_push_rhs / matmul_acc_lhs.
        seeds = [hstage_ref[k - 2 - j] for j in range(k - 1)]
        h_cat0 = seeds[0] if k == 2 else jnp.concatenate(seeds, axis=1)

        def step(i, h_cat):
            pre = jnp.dot(h_cat, whh_ref[...],
                          preferred_element_type=jnp.float32) + xproj_ref[i]
            h_t = jnp.tanh(pre).astype(compute_dtype)  # (Bblk, H)
            hstage_ref[i + (k - 1)] = h_t
            if k == 2:
                return h_t
            # Shift the history: new h_cat = [h_t, old h_cat minus oldest].
            return jnp.concatenate([h_t, h_cat[:, :hist - H]], axis=1)

        jax.lax.fori_loop(0, Tc, step, h_cat0, unroll=True)

        # (3) Deferred output projection: out_t = sum_j h_{t-j} @ Wmo_j^T as
        # k big-M GEMMs over shifted slabs of the staged hidden history,
        # accumulated in f32, written as one lane-dense (Tc,Bblk,OUT) store.
        def mo_term(j):
            slab = hstage_ref[pl.ds(k - 1 - j, Tc)].reshape(Tc * Bblk, H)
            w_j = wmo_ref[pl.ds(j * H, H), :]
            return jnp.dot(slab, w_j, preferred_element_type=jnp.float32)

        acc = mo_term(0)
        for j in range(1, k):
            acc = acc + mo_term(j)
        out_ref[...] = acc.reshape(Tc, Bblk, -1).astype(out_ref.dtype)

        # (4) Carry the last k-1 hidden states into the seed slots for the
        # next time block (Tc >= k-1, so source/destination never overlap).
        hstage_ref[pl.ds(0, k - 1)] = hstage_ref[pl.ds(Tc, k - 1)]

        # TODO(synk): the PyTorch line `h_prevs[0] = h_prevs[0].data,
        # requires_grad = False` is an autograd detach (and broken Python);
        # it is a no-op for the forward pass and is not translated.

    return kernel


@functools.partial(
    jax.jit,
    static_argnames=("k", "hidden_size", "time_block", "batch_blocks",
                     "compute_dtype", "out_dtype", "single_buffer_weights"))
def _unrolled_lm_impl(X, Wxh, bxh, Whh, Wmo, *, k, hidden_size, time_block,
                      batch_blocks, compute_dtype, out_dtype,
                      single_buffer_weights):
    assert k >= 2, "k must be >= 2 (k == 1 gives a zero-width hidden history)"
    T, B, in_size = X.shape
    out_size = Wmo.shape[0]

    cdt = jnp.dtype(compute_dtype)
    odt = jnp.dtype(out_dtype)
    sub = 16 if cdt.itemsize < 4 else 8  # sublane multiple for packed dtypes

    H = _round_up(hidden_size, 128)
    IN = _round_up(in_size, 128)
    OUT = _round_up(out_size, 128)
    hist = (k - 1) * H
    Bblk = _round_up(max(1, _cdiv(B, batch_blocks)), sub)
    B_pad = Bblk * batch_blocks

    # --- time-block size: amortize grid-step overhead, stay inside VMEM -----
    Tc = max(1, int(time_block))
    Tc = min(Tc, max(T, 1))  # no point padding time beyond a single block
    Tc = max(Tc, k - 1)      # required by the hstage seed carry-over

    def _vmem_bytes(tc):
        wfac = 1 if single_buffer_weights else 2
        x_blk = 2 * tc * Bblk * IN * cdt.itemsize        # double-buffered in
        o_blk = 2 * tc * Bblk * OUT * odt.itemsize       # double-buffered out
        wts = wfac * ((IN * H + hist * H + k * H * OUT) * cdt.itemsize + H * 4)
        xproj = tc * Bblk * H * 4                        # f32 scratch
        hstage = (tc + k - 1) * Bblk * H * cdt.itemsize  # staged hidden
        return x_blk + o_blk + wts + xproj + hstage

    tc_floor = max(k - 1, 1)
    while Tc > tc_floor and 1.2 * _vmem_bytes(Tc) > _VMEM_CAP_BYTES:
        Tc = max(Tc // 2, tc_floor)
    # ~1.2x margin on the true footprint; clamp to a ceiling safe for v7x.
    vmem_limit = int(min(_VMEM_CAP_BYTES,
                         max(32 * 1024 * 1024, 1.2 * _vmem_bytes(Tc))))
    T_pad = _round_up(T, Tc)

    # --- padded, transposed weights (zero padding keeps padded hidden lanes
    # exactly 0 through tanh; padded output lanes are always 0) --------------
    # h_cat layout: (k-1) blocks of H lanes, most-recent hidden first.
    whh_t = jnp.zeros((hist, H), jnp.float32)
    for j in range(k - 1):
        whh_t = whh_t.at[j * H:j * H + hidden_size, :hidden_size].set(
            Whh[:, j * hidden_size:(j + 1) * hidden_size].T)
    whh_t = whh_t.astype(cdt)

    wxh_t = jnp.zeros((IN, H), jnp.float32)
    wxh_t = wxh_t.at[:in_size, :hidden_size].set(Wxh.T).astype(cdt)

    wmo_t = jnp.zeros((k * H, OUT), jnp.float32)
    for j in range(k):
        wmo_t = wmo_t.at[j * H:j * H + hidden_size, :out_size].set(
            Wmo[:, j * hidden_size:(j + 1) * hidden_size].T)
    wmo_t = wmo_t.astype(cdt)

    bias = jnp.zeros((1, H), jnp.float32).at[0, :hidden_size].set(bxh)

    # --- padded input, time-major.  Padded batch rows compute tanh(bias) and
    # padded trailing timesteps compute junk hidden states, but both only
    # ever feed padded rows / padded timesteps, which are sliced off below. --
    Xp = jnp.zeros((T_pad, B_pad, IN), cdt).at[:T, :B, :in_size].set(
        X.astype(cdt))

    # Constant-index weight operands: single-buffer them (fetched once, stay
    # VMEM-resident) when the Pallas version supports per-spec buffer counts.
    wkw = dict(pipeline_mode=pl.Buffered(1)) if single_buffer_weights else {}

    grid_spec = pltpu.PrefetchScalarGridSpec(
        num_scalar_prefetch=0,
        grid=(batch_blocks, T_pad // Tc),
        in_specs=[
            pl.BlockSpec((Tc, Bblk, IN), lambda b, t: (t, b, 0)),   # X block
            pl.BlockSpec(wxh_t.shape, lambda b, t: (0, 0), **wkw),  # Wxh^T
            pl.BlockSpec(whh_t.shape, lambda b, t: (0, 0), **wkw),  # Whh^T
            pl.BlockSpec(bias.shape, lambda b, t: (0, 0), **wkw),   # bias
            pl.BlockSpec(wmo_t.shape, lambda b, t: (0, 0), **wkw),  # Wmo^T
        ],
        out_specs=pl.BlockSpec((Tc, Bblk, OUT), lambda b, t: (t, b, 0)),
        scratch_shapes=[
            pltpu.VMEM((Tc, Bblk, H), jnp.float32),     # hoisted x-projection
            pltpu.VMEM((Tc + k - 1, Bblk, H), cdt),     # staged hidden states
        ],
    )

    out_padded = pl.pallas_call(
        _make_kernel(k, H, Tc, Bblk, cdt),
        out_shape=jax.ShapeDtypeStruct((T_pad, B_pad, OUT), odt),
        grid_spec=grid_spec,
        compiler_params=pltpu.CompilerParams(
            dimension_semantics=("parallel", "arbitrary"),
            vmem_limit_bytes=vmem_limit,
        ),
    )(Xp, wxh_t, whh_t, bias, wmo_t)

    return out_padded[:T, :B, :out_size]


def unrolled_lm_forward(X, Wxh, bxh, Whh, Wmo, *, k, hidden_size,
                        time_block=32, batch_blocks=1,
                        compute_dtype=jnp.bfloat16, out_dtype=jnp.float32):
    """UnrolledLM forward.  X: (T, B, in).  Weights in PyTorch nn.Linear
    layout: Wxh (hidden, in), bxh (hidden,), Whh (hidden, (k-1)*hidden),
    Wmo (out, k*hidden).  Returns (T, B, out) in `out_dtype`.

    batch_blocks: leading "parallel" grid axis; keep 1 on single-TensorCore
    chips (v5e/v6e), use 2 on v7x megacore only when the per-core batch stays
    large.  out_dtype=jnp.bfloat16 halves HBM writeback (useful on v5e).
    """
    kwargs = dict(k=k, hidden_size=hidden_size, time_block=time_block,
                  batch_blocks=batch_blocks, compute_dtype=compute_dtype,
                  out_dtype=out_dtype)
    try:
        return _unrolled_lm_impl(X, Wxh, bxh, Whh, Wmo,
                                 single_buffer_weights=True, **kwargs)
    except Exception:
        # Fallback for Pallas versions without per-BlockSpec buffer counts
        # (pl.Buffered); weights then just get the default double-buffering.
        return _unrolled_lm_impl(X, Wxh, bxh, Whh, Wmo,
                                 single_buffer_weights=False, **kwargs)


def unrolled_lm_reference(X, Wxh, bxh, Whh, Wmo, k, hidden_size):
    """Pure-JAX (f32) replica of the PyTorch forward for verification."""
    T, B, _ = X.shape
    h_prevs = [jnp.zeros((B, hidden_size), jnp.float32) for _ in range(k - 1)]
    outs = []
    for t in range(T):
        h_cat = jnp.concatenate(list(reversed(h_prevs)), axis=1)
        h_t = jnp.tanh(h_cat @ Whh.T + X[t] @ Wxh.T + bxh)
        h_out = jnp.concatenate([h_t] + list(reversed(h_prevs)), axis=1)
        outs.append(h_out @ Wmo.T)
        h_prevs.append(h_t)
        h_prevs.pop(0)
    return jnp.stack(outs, 0)


if __name__ == "__main__":
    # Small, deterministic configuration.
    n_steps, batch = 8, 2
    in_size, k, hidden_size, out_size = 16, 3, 32, 16

    key = jax.random.PRNGKey(0)
    kx, kwxh, kbxh, kwhh, kwmo = jax.random.split(key, 5)

    X = jax.random.normal(kx, (n_steps, batch, in_size), jnp.float32)

    # PyTorch nn.Linear layouts: weight is (out_features, in_features).
    scale = 0.1
    Wxh = scale * jax.random.normal(kwxh, (hidden_size, in_size), jnp.float32)
    bxh = scale * jax.random.normal(kbxh, (hidden_size,), jnp.float32)
    Whh = scale * jax.random.normal(
        kwhh, (hidden_size, (k - 1) * hidden_size), jnp.float32)
    Wmo = scale * jax.random.normal(
        kwmo, (out_size, k * hidden_size), jnp.float32)

    out = unrolled_lm_forward(
        X, Wxh, bxh, Whh, Wmo,
        k=k, hidden_size=hidden_size,
        time_block=4,       # 2 time blocks -> exercises the carried history
        batch_blocks=1,     # single-TensorCore friendly (v5e/v6e)
        compute_dtype=jnp.bfloat16,
        out_dtype=jnp.float32,
    )
    out = jax.block_until_ready(out)

    ref = unrolled_lm_reference(X, Wxh, bxh, Whh, Wmo, k, hidden_size)
    # bf16 MXU inputs / bf16-carried history with f32 accumulation =>
    # relaxed tolerance vs the f32 reference (re-check at long seq lengths).
    np.testing.assert_allclose(np.asarray(out), np.asarray(ref),
                               rtol=2e-2, atol=2e-2)

    print("KERNEL_OK")
</pallas_src>

<mosaic_0001>
module attributes {stable_mosaic.version = 11 : i64} {
  func.func @kernel(%arg0: i32, %arg1: i32, %arg2: memref<4x16x128xbf16, #tpu.memory_space<vmem>>, %arg3: memref<128x128xbf16, #tpu.memory_space<vmem>>, %arg4: memref<256x128xbf16, #tpu.memory_space<vmem>>, %arg5: memref<1x128xf32, #tpu.memory_space<vmem>>, %arg6: memref<384x128xbf16, #tpu.memory_space<vmem>>, %arg7: memref<4x16x128xf32, #tpu.memory_space<vmem>>, %arg8: memref<4x16x128xf32, #tpu.memory_space<vmem>>, %arg9: memref<6x16x128xbf16, #tpu.memory_space<vmem>>) attributes {dimension_semantics = [#tpu.dimension_semantics<parallel>, #tpu.dimension_semantics<arbitrary>], iteration_bounds = array<i64: 1, 2>, scalar_prefetch = 0 : i64, scratch_operands = 2 : i64, tpu.core_type = #tpu.core_type<tc>, window_params = [{transform_indices = @transform_0, window_bounds = array<i64: 4, 16, 128>}, {pipeline_mode = #tpu.pipeline_mode<synchronous>, transform_indices = @transform_1, window_bounds = array<i64: 128, 128>}, {pipeline_mode = #tpu.pipeline_mode<synchronous>, transform_indices = @transform_2, window_bounds = array<i64: 256, 128>}, {pipeline_mode = #tpu.pipeline_mode<synchronous>, transform_indices = @transform_3, window_bounds = array<i64: 1, 128>}, {pipeline_mode = #tpu.pipeline_mode<synchronous>, transform_indices = @transform_4, window_bounds = array<i64: 384, 128>}, {transform_indices = @transform_5, window_bounds = array<i64: 4, 16, 128>}]} {
    %c0_i32 = arith.constant 0 : i32
    %0 = arith.cmpi eq, %arg1, %c0_i32 : i32
    %1 = arith.extui %0 : i1 to i32
    %c0_i32_0 = arith.constant 0 : i32
    %2 = arith.cmpi ne, %1, %c0_i32_0 : i32
    scf.if %2 {
      %cst_71 = arith.constant 0.000000e+00 : bf16
      %95 = vector.broadcast %cst_71 : bf16 to vector<2x16x128xbf16>
      %c0_72 = arith.constant 0 : index
      %c0_73 = arith.constant 0 : index
      %c0_74 = arith.constant 0 : index
      %96 = vector.load %arg9[%c0_72, %c0_73, %c0_74] : memref<6x16x128xbf16, #tpu.memory_space<vmem>>, vector<2x16x128xbf16>
      tpu.vector_store %arg9[%c0_72, %c0_73, %c0_74], %95 {strides = array<i32>} : memref<6x16x128xbf16, #tpu.memory_space<vmem>>, vector<2x16x128xbf16>,
    } else {
    }
    %c0 = arith.constant 0 : index
    %c0_1 = arith.constant 0 : index
    %c0_2 = arith.constant 0 : index
    %3 = vector.load %arg2[%c0, %c0_1, %c0_2] : memref<4x16x128xbf16, #tpu.memory_space<vmem>>, vector<4x16x128xbf16>
    %4 = vector.shape_cast %3 : vector<4x16x128xbf16> to vector<64x128xbf16>
    %c0_3 = arith.constant 0 : index
    %c0_4 = arith.constant 0 : index
    %5 = vector.load %arg3[%c0_3, %c0_4] : memref<128x128xbf16, #tpu.memory_space<vmem>>, vector<128x128xbf16>
    %cst = arith.constant dense<0.000000e+00> : vector<64x128xf32>
    %6 = tpu.matmul %4, %5, %cst {dimension_numbers = #tpu.dot_dimension_numbers<[1], [0], [0], [1], [0, 0, 1, 1], [], []>} : vector<64x128xbf16>, vector<128x128xbf16>, vector<64x128xf32> -> vector<64x128xf32>
    %c0_5 = arith.constant 0 : index
    %c0_6 = arith.constant 0 : index
    %7 = vector.load %arg5[%c0_5, %c0_6] : memref<1x128xf32, #tpu.memory_space<vmem>>, vector<1x128xf32>
    %8 = vector.broadcast %7 : vector<1x128xf32> to vector<64x128xf32>
    %9 = arith.addf %6, %8 : vector<64x128xf32>
    %10 = vector.shape_cast %9 : vector<64x128xf32> to vector<4x16x128xf32>
    %c0_7 = arith.constant 0 : index
    %c0_8 = arith.constant 0 : index
    %c0_9 = arith.constant 0 : index
    %11 = vector.load %arg8[%c0_7, %c0_8, %c0_9] : memref<4x16x128xf32, #tpu.memory_space<vmem>>, vector<4x16x128xf32>
    tpu.vector_store %arg8[%c0_7, %c0_8, %c0_9], %10 {strides = array<i32>} : memref<4x16x128xf32, #tpu.memory_space<vmem>>, vector<4x16x128xf32>,
    %c1 = arith.constant 1 : index
    %c0_10 = arith.constant 0 : index
    %c0_11 = arith.constant 0 : index
    %12 = vector.load %arg9[%c1, %c0_10, %c0_11] : memref<6x16x128xbf16, #tpu.memory_space<vmem>>, vector<1x16x128xbf16>
    %13 = vector.shape_cast %12 : vector<1x16x128xbf16> to vector<16x128xbf16>
    %c0_12 = arith.constant 0 : index
    %c0_13 = arith.constant 0 : index
    %c0_14 = arith.constant 0 : index
    %14 = vector.load %arg9[%c0_12, %c0_13, %c0_14] : memref<6x16x128xbf16, #tpu.memory_space<vmem>>, vector<1x16x128xbf16>
    %15 = vector.shape_cast %14 : vector<1x16x128xbf16> to vector<16x128xbf16>
    %16 = tpu.concatenate %13, %15 in 1 : vector<16x128xbf16>, vector<16x128xbf16> -> vector<16x256xbf16>
    %c0_i32_15 = arith.constant 0 : i32
    %c0_16 = arith.constant 0 : index
    %c0_17 = arith.constant 0 : index
    %17 = vector.load %arg4[%c0_16, %c0_17] : memref<256x128xbf16, #tpu.memory_space<vmem>>, vector<256x128xbf16>
    %cst_18 = arith.constant dense<0.000000e+00> : vector<16x128xf32>
    %18 = tpu.matmul %16, %17, %cst_18 {dimension_numbers = #tpu.dot_dimension_numbers<[1], [0], [0], [1], [0, 0, 1, 1], [], []>} : vector<16x256xbf16>, vector<256x128xbf16>, vector<16x128xf32> -> vector<16x128xf32>
    %19 = arith.index_cast %c0_i32_15 : i32 to index
    %c0_19 = arith.constant 0 : index
    %c0_20 = arith.constant 0 : index
    %20 = vector.load %arg8[%19, %c0_19, %c0_20] : memref<4x16x128xf32, #tpu.memory_space<vmem>>, vector<1x16x128xf32>
    %21 = vector.shape_cast %20 : vector<1x16x128xf32> to vector<16x128xf32>
    %22 = arith.addf %18, %21 : vector<16x128xf32>
    %23 = math.tanh %22 : vector<16x128xf32>
    %24 = arith.truncf %23 : vector<16x128xf32> to vector<16x128xbf16>
    %c2_i32 = arith.constant 2 : i32
    %25 = arith.addi %c0_i32_15, %c2_i32 : i32
    %26 = arith.index_cast %25 : i32 to index
    %c0_21 = arith.constant 0 : index
    %c0_22 = arith.constant 0 : index
    %27 = vector.load %arg9[%26, %c0_21, %c0_22] : memref<6x16x128xbf16, #tpu.memory_space<vmem>>, vector<1x16x128xbf16>
    %28 = vector.shape_cast %27 : vector<1x16x128xbf16> to vector<16x128xbf16>
    %29 = vector.shape_cast %24 : vector<16x128xbf16> to vector<1x16x128xbf16>
    tpu.vector_store %arg9[%26, %c0_21, %c0_22], %29 {strides = array<i32>} : memref<6x16x128xbf16, #tpu.memory_space<vmem>>, vector<1x16x128xbf16>,
    %30 = vector.extract_strided_slice %16 {offsets = [0, 0], sizes = [16, 128], strides = [1, 1]} : vector<16x256xbf16> to vector<16x128xbf16>
    %31 = tpu.concatenate %24, %30 in 1 : vector<16x128xbf16>, vector<16x128xbf16> -> vector<16x256xbf16>
    %c1_i32 = arith.constant 1 : i32
    %c0_23 = arith.constant 0 : index
    %c0_24 = arith.constant 0 : index
    %32 = vector.load %arg4[%c0_23, %c0_24] : memref<256x128xbf16, #tpu.memory_space<vmem>>, vector<256x128xbf16>
    %cst_25 = arith.constant dense<0.000000e+00> : vector<16x128xf32>
    %33 = tpu.matmul %31, %32, %cst_25 {dimension_numbers = #tpu.dot_dimension_numbers<[1], [0], [0], [1], [0, 0, 1, 1], [], []>} : vector<16x256xbf16>, vector<256x128xbf16>, vector<16x128xf32> -> vector<16x128xf32>
    %34 = arith.index_cast %c1_i32 : i32 to index
    %c0_26 = arith.constant 0 : index
    %c0_27 = arith.constant 0 : index
    %35 = vector.load %arg8[%34, %c0_26, %c0_27] : memref<4x16x128xf32, #tpu.memory_space<vmem>>, vector<1x16x128xf32>
    %36 = vector.shape_cast %35 : vector<1x16x128xf32> to vector<16x128xf32>
    %37 = arith.addf %33, %36 : vector<16x128xf32>
    %38 = math.tanh %37 : vector<16x128xf32>
    %39 = arith.truncf %38 : vector<16x128xf32> to vector<16x128xbf16>
    %c2_i32_28 = arith.constant 2 : i32
    %40 = arith.addi %c1_i32, %c2_i32_28 : i32
    %41 = arith.index_cast %40 : i32 to index
    %c0_29 = arith.constant 0 : index
    %c0_30 = arith.constant 0 : index
    %42 = vector.load %arg9[%41, %c0_29, %c0_30] : memref<6x16x128xbf16, #tpu.memory_space<vmem>>, vector<1x16x128xbf16>
    %43 = vector.shape_cast %42 : vector<1x16x128xbf16> to vector<16x128xbf16>
    %44 = vector.shape_cast %39 : vector<16x128xbf16> to vector<1x16x128xbf16>
    tpu.vector_store %arg9[%41, %c0_29, %c0_30], %44 {strides = array<i32>} : memref<6x16x128xbf16, #tpu.memory_space<vmem>>, vector<1x16x128xbf16>,
    %45 = vector.extract_strided_slice %31 {offsets = [0, 0], sizes = [16, 128], strides = [1, 1]} : vector<16x256xbf16> to vector<16x128xbf16>
    %46 = tpu.concatenate %39, %45 in 1 : vector<16x128xbf16>, vector<16x128xbf16> -> vector<16x256xbf16>
    %c2_i32_31 = arith.constant 2 : i32
    %c0_32 = arith.constant 0 : index
    %c0_33 = arith.constant 0 : index
    %47 = vector.load %arg4[%c0_32, %c0_33] : memref<256x128xbf16, #tpu.memory_space<vmem>>, vector<256x128xbf16>
    %cst_34 = arith.constant dense<0.000000e+00> : vector<16x128xf32>
    %48 = tpu.matmul %46, %47, %cst_34 {dimension_numbers = #tpu.dot_dimension_numbers<[1], [0], [0], [1], [0, 0, 1, 1], [], []>} : vector<16x256xbf16>, vector<256x128xbf16>, vector<16x128xf32> -> vector<16x128xf32>
    %49 = arith.index_cast %c2_i32_31 : i32 to index
    %c0_35 = arith.constant 0 : index
    %c0_36 = arith.constant 0 : index
    %50 = vector.load %arg8[%49, %c0_35, %c0_36] : memref<4x16x128xf32, #tpu.memory_space<vmem>>, vector<1x16x128xf32>
    %51 = vector.shape_cast %50 : vector<1x16x128xf32> to vector<16x128xf32>
    %52 = arith.addf %48, %51 : vector<16x128xf32>
    %53 = math.tanh %52 : vector<16x128xf32>
    %54 = arith.truncf %53 : vector<16x128xf32> to vector<16x128xbf16>
    %c2_i32_37 = arith.constant 2 : i32
    %55 = arith.addi %c2_i32_31, %c2_i32_37 : i32
    %56 = arith.index_cast %55 : i32 to index
    %c0_38 = arith.constant 0 : index
    %c0_39 = arith.constant 0 : index
    %57 = vector.load %arg9[%56, %c0_38, %c0_39] : memref<6x16x128xbf16, #tpu.memory_space<vmem>>, vector<1x16x128xbf16>
    %58 = vector.shape_cast %57 : vector<1x16x128xbf16> to vector<16x128xbf16>
    %59 = vector.shape_cast %54 : vector<16x128xbf16> to vector<1x16x128xbf16>
    tpu.vector_store %arg9[%56, %c0_38, %c0_39], %59 {strides = array<i32>} : memref<6x16x128xbf16, #tpu.memory_space<vmem>>, vector<1x16x128xbf16>,
    %60 = vector.extract_strided_slice %46 {offsets = [0, 0], sizes = [16, 128], strides = [1, 1]} : vector<16x256xbf16> to vector<16x128xbf16>
    %61 = tpu.concatenate %54, %60 in 1 : vector<16x128xbf16>, vector<16x128xbf16> -> vector<16x256xbf16>
    %c3_i32 = arith.constant 3 : i32
    %c0_40 = arith.constant 0 : index
    %c0_41 = arith.constant 0 : index
    %62 = vector.load %arg4[%c0_40, %c0_41] : memref<256x128xbf16, #tpu.memory_space<vmem>>, vector<256x128xbf16>
    %cst_42 = arith.constant dense<0.000000e+00> : vector<16x128xf32>
    %63 = tpu.matmul %61, %62, %cst_42 {dimension_numbers = #tpu.dot_dimension_numbers<[1], [0], [0], [1], [0, 0, 1, 1], [], []>} : vector<16x256xbf16>, vector<256x128xbf16>, vector<16x128xf32> -> vector<16x128xf32>
    %64 = arith.index_cast %c3_i32 : i32 to index
    %c0_43 = arith.constant 0 : index
    %c0_44 = arith.constant 0 : index
    %65 = vector.load %arg8[%64, %c0_43, %c0_44] : memref<4x16x128xf32, #tpu.memory_space<vmem>>, vector<1x16x128xf32>
    %66 = vector.shape_cast %65 : vector<1x16x128xf32> to vector<16x128xf32>
    %67 = arith.addf %63, %66 : vector<16x128xf32>
    %68 = math.tanh %67 : vector<16x128xf32>
    %69 = arith.truncf %68 : vector<16x128xf32> to vector<16x128xbf16>
    %c2_i32_45 = arith.constant 2 : i32
    %70 = arith.addi %c3_i32, %c2_i32_45 : i32
    %71 = arith.index_cast %70 : i32 to index
    %c0_46 = arith.constant 0 : index
    %c0_47 = arith.constant 0 : index
    %72 = vector.load %arg9[%71, %c0_46, %c0_47] : memref<6x16x128xbf16, #tpu.memory_space<vmem>>, vector<1x16x128xbf16>
    %73 = vector.shape_cast %72 : vector<1x16x128xbf16> to vector<16x128xbf16>
    %74 = vector.shape_cast %69 : vector<16x128xbf16> to vector<1x16x128xbf16>
    tpu.vector_store %arg9[%71, %c0_46, %c0_47], %74 {strides = array<i32>} : memref<6x16x128xbf16, #tpu.memory_space<vmem>>, vector<1x16x128xbf16>,
    %75 = vector.extract_strided_slice %61 {offsets = [0, 0], sizes = [16, 128], strides = [1, 1]} : vector<16x256xbf16> to vector<16x128xbf16>
    %76 = tpu.concatenate %69, %75 in 1 : vector<16x128xbf16>, vector<16x128xbf16> -> vector<16x256xbf16>
    %c4_i32 = arith.constant 4 : i32
    %c2 = arith.constant 2 : index
    %c0_48 = arith.constant 0 : index
    %c0_49 = arith.constant 0 : index
    %77 = vector.load %arg9[%c2, %c0_48, %c0_49] : memref<6x16x128xbf16, #tpu.memory_space<vmem>>, vector<4x16x128xbf16>
    %78 = vector.shape_cast %77 : vector<4x16x128xbf16> to vector<64x128xbf16>
    %c0_50 = arith.constant 0 : index
    %c0_51 = arith.constant 0 : index
    %79 = vector.load %arg6[%c0_50, %c0_51] : memref<384x128xbf16, #tpu.memory_space<vmem>>, vector<128x128xbf16>
    %cst_52 = arith.constant dense<0.000000e+00> : vector<64x128xf32>
    %80 = tpu.matmul %78, %79, %cst_52 {dimension_numbers = #tpu.dot_dimension_numbers<[1], [0], [0], [1], [0, 0, 1, 1], [], []>} : vector<64x128xbf16>, vector<128x128xbf16>, vector<64x128xf32> -> vector<64x128xf32>
    %c1_53 = arith.constant 1 : index
    %c0_54 = arith.constant 0 : index
    %c0_55 = arith.constant 0 : index
    %81 = vector.load %arg9[%c1_53, %c0_54, %c0_55] : memref<6x16x128xbf16, #tpu.memory_space<vmem>>, vector<4x16x128xbf16>
    %82 = vector.shape_cast %81 : vector<4x16x128xbf16> to vector<64x128xbf16>
    %c128 = arith.constant 128 : index
    %c0_56 = arith.constant 0 : index
    %83 = vector.load %arg6[%c128, %c0_56] : memref<384x128xbf16, #tpu.memory_space<vmem>>, vector<128x128xbf16>
    %cst_57 = arith.constant dense<0.000000e+00> : vector<64x128xf32>
    %84 = tpu.matmul %82, %83, %cst_57 {dimension_numbers = #tpu.dot_dimension_numbers<[1], [0], [0], [1], [0, 0, 1, 1], [], []>} : vector<64x128xbf16>, vector<128x128xbf16>, vector<64x128xf32> -> vector<64x128xf32>
    %85 = arith.addf %80, %84 : vector<64x128xf32>
    %c0_58 = arith.constant 0 : index
    %c0_59 = arith.constant 0 : index
    %c0_60 = arith.constant 0 : index
    %86 = vector.load %arg9[%c0_58, %c0_59, %c0_60] : memref<6x16x128xbf16, #tpu.memory_space<vmem>>, vector<4x16x128xbf16>
    %87 = vector.shape_cast %86 : vector<4x16x128xbf16> to vector<64x128xbf16>
    %c256 = arith.constant 256 : index
    %c0_61 = arith.constant 0 : index
    %88 = vector.load %arg6[%c256, %c0_61] : memref<384x128xbf16, #tpu.memory_space<vmem>>, vector<128x128xbf16>
    %cst_62 = arith.constant dense<0.000000e+00> : vector<64x128xf32>
    %89 = tpu.matmul %87, %88, %cst_62 {dimension_numbers = #tpu.dot_dimension_numbers<[1], [0], [0], [1], [0, 0, 1, 1], [], []>} : vector<64x128xbf16>, vector<128x128xbf16>, vector<64x128xf32> -> vector<64x128xf32>
    %90 = arith.addf %85, %89 : vector<64x128xf32>
    %91 = vector.shape_cast %90 : vector<64x128xf32> to vector<4x16x128xf32>
    %c0_63 = arith.constant 0 : index
    %c0_64 = arith.constant 0 : index
    %c0_65 = arith.constant 0 : index
    %92 = vector.load %arg7[%c0_63, %c0_64, %c0_65] : memref<4x16x128xf32, #tpu.memory_space<vmem>>, vector<4x16x128xf32>
    tpu.vector_store %arg7[%c0_63, %c0_64, %c0_65], %91 {strides = array<i32>} : memref<4x16x128xf32, #tpu.memory_space<vmem>>, vector<4x16x128xf32>,
    %c4 = arith.constant 4 : index
    %c0_66 = arith.constant 0 : index
    %c0_67 = arith.constant 0 : index
    %93 = vector.load %arg9[%c4, %c0_66, %c0_67] : memref<6x16x128xbf16, #tpu.memory_space<vmem>>, vector<2x16x128xbf16>
    %c0_68 = arith.constant 0 : index
    %c0_69 = arith.constant 0 : index
    %c0_70 = arith.constant 0 : index
    %94 = vector.load %arg9[%c0_68, %c0_69, %c0_70] : memref<6x16x128xbf16, #tpu.memory_space<vmem>>, vector<2x16x128xbf16>
    tpu.vector_store %arg9[%c0_68, %c0_69, %c0_70], %93 {strides = array<i32>} : memref<6x16x128xbf16, #tpu.memory_space<vmem>>, vector<2x16x128xbf16>,
    return
  }
  func.func @transform_0(%arg0: i32, %arg1: i32) -> (i32, i32, i32) {
    %c0_i32 = arith.constant 0 : i32
    %c0_i32_0 = arith.constant 0 : i32
    return %arg1, %arg0, %c0_i32 : i32, i32, i32
  }
  func.func @transform_1(%arg0: i32, %arg1: i32) -> (i32, i32) {
    %c0_i32 = arith.constant 0 : i32
    %c0_i32_0 = arith.constant 0 : i32
    %c0_i32_1 = arith.constant 0 : i32
    return %c0_i32, %c0_i32_0 : i32, i32
  }
  func.func @transform_2(%arg0: i32, %arg1: i32) -> (i32, i32) {
    %c0_i32 = arith.constant 0 : i32
    %c0_i32_0 = arith.constant 0 : i32
    %c0_i32_1 = arith.constant 0 : i32
    return %c0_i32, %c0_i32_0 : i32, i32
  }
  func.func @transform_3(%arg0: i32, %arg1: i32) -> (i32, i32) {
    %c0_i32 = arith.constant 0 : i32
    %c0_i32_0 = arith.constant 0 : i32
    %c0_i32_1 = arith.constant 0 : i32
    return %c0_i32, %c0_i32_0 : i32, i32
  }
  func.func @transform_4(%arg0: i32, %arg1: i32) -> (i32, i32) {
    %c0_i32 = arith.constant 0 : i32
    %c0_i32_0 = arith.constant 0 : i32
    %c0_i32_1 = arith.constant 0 : i32
    return %c0_i32, %c0_i32_0 : i32, i32
  }
  func.func @transform_5(%arg0: i32, %arg1: i32) -> (i32, i32, i32) {
    %c0_i32 = arith.constant 0 : i32
    %c0_i32_0 = arith.constant 0 : i32
    return %arg1, %arg0, %c0_i32 : i32, i32, i32
  }
}

module attributes {stable_mosaic.version = 11 : i64} {
  func.func @kernel(%arg0: i32, %arg1: i32, %arg2: memref<4x16x128xbf16, #tpu.memory_space<vmem>>, %arg3: memref<128x128xbf16, #tpu.memory_space<vmem>>, %arg4: memref<256x128xbf16, #tpu.memory_space<vmem>>, %arg5: memref<1x128xf32, #tpu.memory_space<vmem>>, %arg6: memref<384x128xbf16, #tpu.memory_space<vmem>>, %arg7: memref<4x16x128xf32, #tpu.memory_space<vmem>>, %arg8: memref<4x16x128xf32, #tpu.memory_space<vmem>>, %arg9: memref<6x16x128xbf16, #tpu.memory_space<vmem>>) attributes {dimension_semantics = [#tpu.dimension_semantics<parallel>, #tpu.dimension_semantics<arbitrary>], iteration_bounds = array<i64: 1, 2>, scalar_prefetch = 0 : i64, scratch_operands = 2 : i64, tpu.core_type = #tpu.core_type<tc>, window_params = [{transform_indices = @transform_0, window_bounds = array<i64: 4, 16, 128>}, {pipeline_mode = #tpu.pipeline_mode<synchronous>, transform_indices = @transform_1, window_bounds = array<i64: 128, 128>}, {pipeline_mode = #tpu.pipeline_mode<synchronous>, transform_indices = @transform_2, window_bounds = array<i64: 256, 128>}, {pipeline_mode = #tpu.pipeline_mode<synchronous>, transform_indices = @transform_3, window_bounds = array<i64: 1, 128>}, {pipeline_mode = #tpu.pipeline_mode<synchronous>, transform_indices = @transform_4, window_bounds = array<i64: 384, 128>}, {transform_indices = @transform_5, window_bounds = array<i64: 4, 16, 128>}]} {
    %c0_i32 = arith.constant 0 : i32
    %0 = arith.cmpi eq, %arg1, %c0_i32 : i32
    %1 = arith.extui %0 : i1 to i32
    %c0_i32_0 = arith.constant 0 : i32
    %2 = arith.cmpi ne, %1, %c0_i32_0 : i32
    scf.if %2 {
      %cst_71 = arith.constant 0.000000e+00 : bf16
      %95 = vector.broadcast %cst_71 : bf16 to vector<2x16x128xbf16>
      %c0_72 = arith.constant 0 : index
      %c0_73 = arith.constant 0 : index
      %c0_74 = arith.constant 0 : index
      %96 = vector.load %arg9[%c0_72, %c0_73, %c0_74] : memref<6x16x128xbf16, #tpu.memory_space<vmem>>, vector<2x16x128xbf16>
      tpu.vector_store %arg9[%c0_72, %c0_73, %c0_74], %95 {strides = array<i32>} : memref<6x16x128xbf16, #tpu.memory_space<vmem>>, vector<2x16x128xbf16>,
    } else {
    }
    %c0 = arith.constant 0 : index
    %c0_1 = arith.constant 0 : index
    %c0_2 = arith.constant 0 : index
    %3 = vector.load %arg2[%c0, %c0_1, %c0_2] : memref<4x16x128xbf16, #tpu.memory_space<vmem>>, vector<4x16x128xbf16>
    %4 = vector.shape_cast %3 : vector<4x16x128xbf16> to vector<64x128xbf16>
    %c0_3 = arith.constant 0 : index
    %c0_4 = arith.constant 0 : index
    %5 = vector.load %arg3[%c0_3, %c0_4] : memref<128x128xbf16, #tpu.memory_space<vmem>>, vector<128x128xbf16>
    %cst = arith.constant dense<0.000000e+00> : vector<64x128xf32>
    %6 = tpu.matmul %4, %5, %cst {dimension_numbers = #tpu.dot_dimension_numbers<[1], [0], [0], [1], [0, 0, 1, 1], [], []>} : vector<64x128xbf16>, vector<128x128xbf16>, vector<64x128xf32> -> vector<64x128xf32>
    %c0_5 = arith.constant 0 : index
    %c0_6 = arith.constant 0 : index
    %7 = vector.load %arg5[%c0_5, %c0_6] : memref<1x128xf32, #tpu.memory_space<vmem>>, vector<1x128xf32>
    %8 = vector.broadcast %7 : vector<1x128xf32> to vector<64x128xf32>
    %9 = arith.addf %6, %8 : vector<64x128xf32>
    %10 = vector.shape_cast %9 : vector<64x128xf32> to vector<4x16x128xf32>
    %c0_7 = arith.constant 0 : index
    %c0_8 = arith.constant 0 : index
    %c0_9 = arith.constant 0 : index
    %11 = vector.load %arg8[%c0_7, %c0_8, %c0_9] : memref<4x16x128xf32, #tpu.memory_space<vmem>>, vector<4x16x128xf32>
    tpu.vector_store %arg8[%c0_7, %c0_8, %c0_9], %10 {strides = array<i32>} : memref<4x16x128xf32, #tpu.memory_space<vmem>>, vector<4x16x128xf32>,
    %c1 = arith.constant 1 : index
    %c0_10 = arith.constant 0 : index
    %c0_11 = arith.constant 0 : index
    %12 = vector.load %arg9[%c1, %c0_10, %c0_11] : memref<6x16x128xbf16, #tpu.memory_space<vmem>>, vector<1x16x128xbf16>
    %13 = vector.shape_cast %12 : vector<1x16x128xbf16> to vector<16x128xbf16>
    %c0_12 = arith.constant 0 : index
    %c0_13 = arith.constant 0 : index
    %c0_14 = arith.constant 0 : index
    %14 = vector.load %arg9[%c0_12, %c0_13, %c0_14] : memref<6x16x128xbf16, #tpu.memory_space<vmem>>, vector<1x16x128xbf16>
    %15 = vector.shape_cast %14 : vector<1x16x128xbf16> to vector<16x128xbf16>
    %16 = tpu.concatenate %13, %15 in 1 : vector<16x128xbf16>, vector<16x128xbf16> -> vector<16x256xbf16>
    %c0_i32_15 = arith.constant 0 : i32
    %c0_16 = arith.constant 0 : index
    %c0_17 = arith.constant 0 : index
    %17 = vector.load %arg4[%c0_16, %c0_17] : memref<256x128xbf16, #tpu.memory_space<vmem>>, vector<256x128xbf16>
    %cst_18 = arith.constant dense<0.000000e+00> : vector<16x128xf32>
    %18 = tpu.matmul %16, %17, %cst_18 {dimension_numbers = #tpu.dot_dimension_numbers<[1], [0], [0], [1], [0, 0, 1, 1], [], []>} : vector<16x256xbf16>, vector<256x128xbf16>, vector<16x128xf32> -> vector<16x128xf32>
    %19 = arith.index_cast %c0_i32_15 : i32 to index
    %c0_19 = arith.constant 0 : index
    %c0_20 = arith.constant 0 : index
    %20 = vector.load %arg8[%19, %c0_19, %c0_20] : memref<4x16x128xf32, #tpu.memory_space<vmem>>, vector<1x16x128xf32>
    %21 = vector.shape_cast %20 : vector<1x16x128xf32> to vector<16x128xf32>
    %22 = arith.addf %18, %21 : vector<16x128xf32>
    %23 = math.tanh %22 : vector<16x128xf32>
    %24 = arith.truncf %23 : vector<16x128xf32> to vector<16x128xbf16>
    %c2_i32 = arith.constant 2 : i32
    %25 = arith.addi %c0_i32_15, %c2_i32 : i32
    %26 = arith.index_cast %25 : i32 to index
    %c0_21 = arith.constant 0 : index
    %c0_22 = arith.constant 0 : index
    %27 = vector.load %arg9[%26, %c0_21, %c0_22] : memref<6x16x128xbf16, #tpu.memory_space<vmem>>, vector<1x16x128xbf16>
    %28 = vector.shape_cast %27 : vector<1x16x128xbf16> to vector<16x128xbf16>
    %29 = vector.shape_cast %24 : vector<16x128xbf16> to vector<1x16x128xbf16>
    tpu.vector_store %arg9[%26, %c0_21, %c0_22], %29 {strides = array<i32>} : memref<6x16x128xbf16, #tpu.memory_space<vmem>>, vector<1x16x128xbf16>,
    %30 = vector.extract_strided_slice %16 {offsets = [0, 0], sizes = [16, 128], strides = [1, 1]} : vector<16x256xbf16> to vector<16x128xbf16>
    %31 = tpu.concatenate %24, %30 in 1 : vector<16x128xbf16>, vector<16x128xbf16> -> vector<16x256xbf16>
    %c1_i32 = arith.constant 1 : i32
    %c0_23 = arith.constant 0 : index
    %c0_24 = arith.constant 0 : index
    %32 = vector.load %arg4[%c0_23, %c0_24] : memref<256x128xbf16, #tpu.memory_space<vmem>>, vector<256x128xbf16>
    %cst_25 = arith.constant dense<0.000000e+00> : vector<16x128xf32>
    %33 = tpu.matmul %31, %32, %cst_25 {dimension_numbers = #tpu.dot_dimension_numbers<[1], [0], [0], [1], [0, 0, 1, 1], [], []>} : vector<16x256xbf16>, vector<256x128xbf16>, vector<16x128xf32> -> vector<16x128xf32>
    %34 = arith.index_cast %c1_i32 : i32 to index
    %c0_26 = arith.constant 0 : index
    %c0_27 = arith.constant 0 : index
    %35 = vector.load %arg8[%34, %c0_26, %c0_27] : memref<4x16x128xf32, #tpu.memory_space<vmem>>, vector<1x16x128xf32>
    %36 = vector.shape_cast %35 : vector<1x16x128xf32> to vector<16x128xf32>
    %37 = arith.addf %33, %36 : vector<16x128xf32>
    %38 = math.tanh %37 : vector<16x128xf32>
    %39 = arith.truncf %38 : vector<16x128xf32> to vector<16x128xbf16>
    %c2_i32_28 = arith.constant 2 : i32
    %40 = arith.addi %c1_i32, %c2_i32_28 : i32
    %41 = arith.index_cast %40 : i32 to index
    %c0_29 = arith.constant 0 : index
    %c0_30 = arith.constant 0 : index
    %42 = vector.load %arg9[%41, %c0_29, %c0_30] : memref<6x16x128xbf16, #tpu.memory_space<vmem>>, vector<1x16x128xbf16>
    %43 = vector.shape_cast %42 : vector<1x16x128xbf16> to vector<16x128xbf16>
    %44 = vector.shape_cast %39 : vector<16x128xbf16> to vector<1x16x128xbf16>
    tpu.vector_store %arg9[%41, %c0_29, %c0_30], %44 {strides = array<i32>} : memref<6x16x128xbf16, #tpu.memory_space<vmem>>, vector<1x16x128xbf16>,
    %45 = vector.extract_strided_slice %31 {offsets = [0, 0], sizes = [16, 128], strides = [1, 1]} : vector<16x256xbf16> to vector<16x128xbf16>
    %46 = tpu.concatenate %39, %45 in 1 : vector<16x128xbf16>, vector<16x128xbf16> -> vector<16x256xbf16>
    %c2_i32_31 = arith.constant 2 : i32
    %c0_32 = arith.constant 0 : index
    %c0_33 = arith.constant 0 : index
    %47 = vector.load %arg4[%c0_32, %c0_33] : memref<256x128xbf16, #tpu.memory_space<vmem>>, vector<256x128xbf16>
    %cst_34 = arith.constant dense<0.000000e+00> : vector<16x128xf32>
    %48 = tpu.matmul %46, %47, %cst_34 {dimension_numbers = #tpu.dot_dimension_numbers<[1], [0], [0], [1], [0, 0, 1, 1], [], []>} : vector<16x256xbf16>, vector<256x128xbf16>, vector<16x128xf32> -> vector<16x128xf32>
    %49 = arith.index_cast %c2_i32_31 : i32 to index
    %c0_35 = arith.constant 0 : index
    %c0_36 = arith.constant 0 : index
    %50 = vector.load %arg8[%49, %c0_35, %c0_36] : memref<4x16x128xf32, #tpu.memory_space<vmem>>, vector<1x16x128xf32>
    %51 = vector.shape_cast %50 : vector<1x16x128xf32> to vector<16x128xf32>
    %52 = arith.addf %48, %51 : vector<16x128xf32>
    %53 = math.tanh %52 : vector<16x128xf32>
    %54 = arith.truncf %53 : vector<16x128xf32> to vector<16x128xbf16>
    %c2_i32_37 = arith.constant 2 : i32
    %55 = arith.addi %c2_i32_31, %c2_i32_37 : i32
    %56 = arith.index_cast %55 : i32 to index
    %c0_38 = arith.constant 0 : index
    %c0_39 = arith.constant 0 : index
    %57 = vector.load %arg9[%56, %c0_38, %c0_39] : memref<6x16x128xbf16, #tpu.memory_space<vmem>>, vector<1x16x128xbf16>
    %58 = vector.shape_cast %57 : vector<1x16x128xbf16> to vector<16x128xbf16>
    %59 = vector.shape_cast %54 : vector<16x128xbf16> to vector<1x16x128xbf16>
    tpu.vector_store %arg9[%56, %c0_38, %c0_39], %59 {strides = array<i32>} : memref<6x16x128xbf16, #tpu.memory_space<vmem>>, vector<1x16x128xbf16>,
    %60 = vector.extract_strided_slice %46 {offsets = [0, 0], sizes = [16, 128], strides = [1, 1]} : vector<16x256xbf16> to vector<16x128xbf16>
    %61 = tpu.concatenate %54, %60 in 1 : vector<16x128xbf16>, vector<16x128xbf16> -> vector<16x256xbf16>
    %c3_i32 = arith.constant 3 : i32
    %c0_40 = arith.constant 0 : index
    %c0_41 = arith.constant 0 : index
    %62 = vector.load %arg4[%c0_40, %c0_41] : memref<256x128xbf16, #tpu.memory_space<vmem>>, vector<256x128xbf16>
    %cst_42 = arith.constant dense<0.000000e+00> : vector<16x128xf32>
    %63 = tpu.matmul %61, %62, %cst_42 {dimension_numbers = #tpu.dot_dimension_numbers<[1], [0], [0], [1], [0, 0, 1, 1], [], []>} : vector<16x256xbf16>, vector<256x128xbf16>, vector<16x128xf32> -> vector<16x128xf32>
    %64 = arith.index_cast %c3_i32 : i32 to index
    %c0_43 = arith.constant 0 : index
    %c0_44 = arith.constant 0 : index
    %65 = vector.load %arg8[%64, %c0_43, %c0_44] : memref<4x16x128xf32, #tpu.memory_space<vmem>>, vector<1x16x128xf32>
    %66 = vector.shape_cast %65 : vector<1x16x128xf32> to vector<16x128xf32>
    %67 = arith.addf %63, %66 : vector<16x128xf32>
    %68 = math.tanh %67 : vector<16x128xf32>
    %69 = arith.truncf %68 : vector<16x128xf32> to vector<16x128xbf16>
    %c2_i32_45 = arith.constant 2 : i32
    %70 = arith.addi %c3_i32, %c2_i32_45 : i32
    %71 = arith.index_cast %70 : i32 to index
    %c0_46 = arith.constant 0 : index
    %c0_47 = arith.constant 0 : index
    %72 = vector.load %arg9[%71, %c0_46, %c0_47] : memref<6x16x128xbf16, #tpu.memory_space<vmem>>, vector<1x16x128xbf16>
    %73 = vector.shape_cast %72 : vector<1x16x128xbf16> to vector<16x128xbf16>
    %74 = vector.shape_cast %69 : vector<16x128xbf16> to vector<1x16x128xbf16>
    tpu.vector_store %arg9[%71, %c0_46, %c0_47], %74 {strides = array<i32>} : memref<6x16x128xbf16, #tpu.memory_space<vmem>>, vector<1x16x128xbf16>,
    %75 = vector.extract_strided_slice %61 {offsets = [0, 0], sizes = [16, 128], strides = [1, 1]} : vector<16x256xbf16> to vector<16x128xbf16>
    %76 = tpu.concatenate %69, %75 in 1 : vector<16x128xbf16>, vector<16x128xbf16> -> vector<16x256xbf16>
    %c4_i32 = arith.constant 4 : i32
    %c2 = arith.constant 2 : index
    %c0_48 = arith.constant 0 : index
    %c0_49 = arith.constant 0 : index
    %77 = vector.load %arg9[%c2, %c0_48, %c0_49] : memref<6x16x128xbf16, #tpu.memory_space<vmem>>, vector<4x16x128xbf16>
    %78 = vector.shape_cast %77 : vector<4x16x128xbf16> to vector<64x128xbf16>
    %c0_50 = arith.constant 0 : index
    %c0_51 = arith.constant 0 : index
    %79 = vector.load %arg6[%c0_50, %c0_51] : memref<384x128xbf16, #tpu.memory_space<vmem>>, vector<128x128xbf16>
    %cst_52 = arith.constant dense<0.000000e+00> : vector<64x128xf32>
    %80 = tpu.matmul %78, %79, %cst_52 {dimension_numbers = #tpu.dot_dimension_numbers<[1], [0], [0], [1], [0, 0, 1, 1], [], []>} : vector<64x128xbf16>, vector<128x128xbf16>, vector<64x128xf32> -> vector<64x128xf32>
    %c1_53 = arith.constant 1 : index
    %c0_54 = arith.constant 0 : index
    %c0_55 = arith.constant 0 : index
    %81 = vector.load %arg9[%c1_53, %c0_54, %c0_55] : memref<6x16x128xbf16, #tpu.memory_space<vmem>>, vector<4x16x128xbf16>
    %82 = vector.shape_cast %81 : vector<4x16x128xbf16> to vector<64x128xbf16>
    %c128 = arith.constant 128 : index
    %c0_56 = arith.constant 0 : index
    %83 = vector.load %arg6[%c128, %c0_56] : memref<384x128xbf16, #tpu.memory_space<vmem>>, vector<128x128xbf16>
    %cst_57 = arith.constant dense<0.000000e+00> : vector<64x128xf32>
    %84 = tpu.matmul %82, %83, %cst_57 {dimension_numbers = #tpu.dot_dimension_numbers<[1], [0], [0], [1], [0, 0, 1, 1], [], []>} : vector<64x128xbf16>, vector<128x128xbf16>, vector<64x128xf32> -> vector<64x128xf32>
    %85 = arith.addf %80, %84 : vector<64x128xf32>
    %c0_58 = arith.constant 0 : index
    %c0_59 = arith.constant 0 : index
    %c0_60 = arith.constant 0 : index
    %86 = vector.load %arg9[%c0_58, %c0_59, %c0_60] : memref<6x16x128xbf16, #tpu.memory_space<vmem>>, vector<4x16x128xbf16>
    %87 = vector.shape_cast %86 : vector<4x16x128xbf16> to vector<64x128xbf16>
    %c256 = arith.constant 256 : index
    %c0_61 = arith.constant 0 : index
    %88 = vector.load %arg6[%c256, %c0_61] : memref<384x128xbf16, #tpu.memory_space<vmem>>, vector<128x128xbf16>
    %cst_62 = arith.constant dense<0.000000e+00> : vector<64x128xf32>
    %89 = tpu.matmul %87, %88, %cst_62 {dimension_numbers = #tpu.dot_dimension_numbers<[1], [0], [0], [1], [0, 0, 1, 1], [], []>} : vector<64x128xbf16>, vector<128x128xbf16>, vector<64x128xf32> -> vector<64x128xf32>
    %90 = arith.addf %85, %89 : vector<64x128xf32>
    %91 = vector.shape_cast %90 : vector<64x128xf32> to vector<4x16x128xf32>
    %c0_63 = arith.constant 0 : index
    %c0_64 = arith.constant 0 : index
    %c0_65 = arith.constant 0 : index
    %92 = vector.load %arg7[%c0_63, %c0_64, %c0_65] : memref<4x16x128xf32, #tpu.memory_space<vmem>>, vector<4x16x128xf32>
    tpu.vector_store %arg7[%c0_63, %c0_64, %c0_65], %91 {strides = array<i32>} : memref<4x16x128xf32, #tpu.memory_space<vmem>>, vector<4x16x128xf32>,
    %c4 = arith.constant 4 : index
    %c0_66 = arith.constant 0 : index
    %c0_67 = arith.constant 0 : index
    %93 = vector.load %arg9[%c4, %c0_66, %c0_67] : memref<6x16x128xbf16, #tpu.memory_space<vmem>>, vector<2x16x128xbf16>
    %c0_68 = arith.constant 0 : index
    %c0_69 = arith.constant 0 : index
    %c0_70 = arith.constant 0 : index
    %94 = vector.load %arg9[%c0_68, %c0_69, %c0_70] : memref<6x16x128xbf16, #tpu.memory_space<vmem>>, vector<2x16x128xbf16>
    tpu.vector_store %arg9[%c0_68, %c0_69, %c0_70], %93 {strides = array<i32>} : memref<6x16x128xbf16, #tpu.memory_space<vmem>>, vector<2x16x128xbf16>,
    return
  }
  func.func @transform_0(%arg0: i32, %arg1: i32) -> (i32, i32, i32) {
    %c0_i32 = arith.constant 0 : i32
    %c0_i32_0 = arith.constant 0 : i32
    return %arg1, %arg0, %c0_i32 : i32, i32, i32
  }
  func.func @transform_1(%arg0: i32, %arg1: i32) -> (i32, i32) {
    %c0_i32 = arith.constant 0 : i32
    %c0_i32_0 = arith.constant 0 : i32
    %c0_i32_1 = arith.constant 0 : i32
    return %c0_i32, %c0_i32_0 : i32, i32
  }
  func.func @transform_2(%arg0: i32, %arg1: i32) -> (i32, i32) {
    %c0_i32 = arith.constant 0 : i32
    %c0_i32_0 = arith.constant 0 : i32
    %c0_i32_1 = arith.constant 0 : i32
    return %c0_i32, %c0_i32_0 : i32, i32
  }
  func.func @transform_3(%arg0: i32, %arg1: i32) -> (i32, i32) {
    %c0_i32 = arith.constant 0 : i32
    %c0_i32_0 = arith.constant 0 : i32
    %c0_i32_1 = arith.constant 0 : i32
    return %c0_i32, %c0_i32_0 : i32, i32
  }
  func.func @transform_4(%arg0: i32, %arg1: i32) -> (i32, i32) {
    %c0_i32 = arith.constant 0 : i32
    %c0_i32_0 = arith.constant 0 : i32
    %c0_i32_1 = arith.constant 0 : i32
    return %c0_i32, %c0_i32_0 : i32, i32
  }
  func.func @transform_5(%arg0: i32, %arg1: i32) -> (i32, i32, i32) {
    %c0_i32 = arith.constant 0 : i32
    %c0_i32_0 = arith.constant 0 : i32
    return %arg1, %arg0, %c0_i32 : i32, i32, i32
  }
}

</mosaic_0001>

<bundles_post_ra>
// kernel: _unrolled_lm_impl.1
= control target key start
LH: loop header
LB: loop body
LE: loop exit
PB: predicated region body
PF: predicated region fallthrough
CT: control target
= control target key end

     0   :  { %s2419_s18 = smov 0   ;;  %s2421_s19 = smov 0   ;;  %s2784_s0 = inlined_call_operand.vmem [shape: bf16[8,16,128], index: 0, kind: input, shape index: {}]   ;;  %s2785_s1 = inlined_call_operand.vmem [shape: bf16[128,128], index: 1, kind: input, shape index: {}]   ;;  %s2786_s2 = inlined_call_operand.vmem [shape: bf16[256,128], index: 2, kind: input, shape index: {}]   ;;  %s2787_s3 = inlined_call_operand.vmem [shape: f32[1,128], index: 3, kind: input, shape index: {}]   ;;  %s2788_s4 = inlined_call_operand.vmem [shape: bf16[384,128], index: 4, kind: input, shape index: {}]   ;;  %s2789_s5 = inlined_call_operand.vmem [shape: f32[8,16,128], index: 5, kind: output, shape index: {}]  }
   0x1   :  { %s2423_s20 = smov 0  }
   0x2 LB: > { %s24_s21 = sadd.s32 1, %s2382_s19  ;;  %p1814_p0 = scmp.ge.s32.totalorder %s2386_s20, 1  ;;  %s2386_s20 = sphi %s2423_s20, %s15_s20   ;;  %s2382_s19 = sphi %s2421_s19, %s2791_s19   ;;  %s2378_s18 = sphi %s2419_s18, %s2790_s18  }
   0x3   : > { %p25_p1 = scmp.ge.s32.totalorder %s24_s21, 2  ;;  %p210_p2 = scmp.lt.s32.totalorder %s2386_s20, 3 }
   0x5   : > { %s2793_s21 = smov (%p25_p1, %s24_s21), 0  ;;  %p211_p3 = pnand %p1814_p0, %p210_p2 }
   0x6   : > { %s1815_s22 = sshll.u32 (!%p211_p3), %s2378_s18, 2  ;;  %p1821_p5 = scmp.ne.s32.totalorder (!%p211_p3), %s2378_s18, 0 }
   0x7   : > { %214 = sbr.rel (%p211_p3) target bundleno = 1143 (0x477), region = 40  ;;  %p250_p4 = scmp.lt.s32.totalorder (!%p211_p3), %s1815_s22, 7 }
   0xc   : > { %s2795_s22 = smov (!%p250_p4, %s1815_s22), 7  ;;  %276 = sbr.rel (%p1821_p5) target bundleno = 20 (0x14), region = 44 }
   0xd   : > { %s1947_s23 = sshll.u32 %s2795_s22, 3  ;;  %s1948_s24 = sshll.u32 %s2795_s22, 4 }
   0xe   : > { %s2440_s27 = scalar_lea.vmem %s2784_s0, %s1947_s23  ;;  %s2445_s30 = scalar_lea.vmem %s2789_s5, %s1948_s24 }
  0x11   : > { %v2388_v0 = vmov 0  }
  0x12   : > { %277 = vst [vmem:[#allocation3] sm:$0xf] %v2388_v0  ;;  %278 = vst [vmem:[#allocation3 + $0x4] sm:$0xf] %v2388_v0 }
  0x13   : > { %279 = vst [vmem:[#allocation3 + $0x8] sm:$0xf] %v2388_v0  ;;  %280 = vst [vmem:[#allocation3 + $0xc] sm:$0xf] %v2388_v0 }
  0x14 PF: > { %v2234_v1 = vld [vmem:[%s2785_s1 + $0x38] sm:$0xff]   ;;  %v2237_v4 = vld [vmem:[%s2785_s1 + $0x30] sm:$0xff]   ;;  %v2240_v7 = vld [vmem:[%s2785_s1 + $0x28] sm:$0xff]  }
  0x15   : > { %v2235_v2 = vld [vmem:[%s2786_s2 + $0x78] sm:$0xff]   ;;  %2113 = vmatprep.subr.bf16.mxu0 %v2234_v1  ;;  %v2238_v5 = vld [vmem:[%s2786_s2 + $0x70] sm:$0xff]   ;;  %v2241_v8 = vld [vmem:[%s2786_s2 + $0x68] sm:$0xff]  }
  0x16   : > { %v2236_v3 = vld [vmem:[%s2786_s2 + $0x38] sm:$0xff]   ;;  %1989 = vmatprep.subr.bf16.mxu1 %v2235_v2  ;;  %2114 = vmatpush3.bf16.msra.mxu0 %v2234_v1  ;;  %v2239_v6 = vld [vmem:[%s2786_s2 + $0x30] sm:$0xff]   ;;  %v2242_v9 = vld [vmem:[%s2786_s2 + $0x28] sm:$0xff]  }
  0x17   : > { %1990 = vmatpush3.bf16.msra.mxu1 %v2236_v3  ;;  %2115 = vmatprep.subr.bf16.mxu0 %v2237_v4  ;;  %v2243_v10 = vld [vmem:[%s2785_s1 + $0x20] sm:$0xff]   ;;  %v2246_v13 = vld [vmem:[%s2785_s1 + $0x18] sm:$0xff]   ;;  %v2249_v16 = vld [vmem:[%s2785_s1 + $0x10] sm:$0xff]  }
  0x18   : > { %1991 = vmatprep.subr.bf16.mxu1 %v2238_v5  ;;  %v2244_v11 = vld [vmem:[%s2786_s2 + $0x60] sm:$0xff]   ;;  %v2247_v14 = vld [vmem:[%s2786_s2 + $0x58] sm:$0xff]   ;;  %v2250_v17 = vld [vmem:[%s2786_s2 + $0x50] sm:$0xff]  }
  0x19   : > { %v2245_v12 = vld [vmem:[%s2786_s2 + $0x20] sm:$0xff]   ;;  %v2248_v15 = vld [vmem:[%s2786_s2 + $0x18] sm:$0xff]   ;;  %v2251_v18 = vld [vmem:[%s2786_s2 + $0x10] sm:$0xff]  }
  0x1a   : > { %2116 = vmatpush3.bf16.msra.mxu0 %v2237_v4  ;;  %v2252_v19 = vld [vmem:[%s2785_s1 + $0x8] sm:$0xff]   ;;  %v2255_v22 = vld [vmem:[%s2785_s1] sm:$0xff]   ;;  %v2262_v28 = vld [vmem:[%s2786_s2 + $0x78] sm:$0xff]  }
  0x1b   : > { %1992 = vmatpush3.bf16.msra.mxu1 %v2239_v6  ;;  %2117 = vmatprep.subr.bf16.mxu0 %v2240_v7  ;;  %v2253_v20 = vld [vmem:[%s2786_s2 + $0x48] sm:$0xff]   ;;  %v2256_v23 = vld [vmem:[%s2786_s2 + $0x40] sm:$0xff]   ;;  %v2263_v30 = vld [vmem:[%s2786_s2 + $0x38] sm:$0xff]  }
  0x1c   : > { %1993 = vmatprep.subr.bf16.mxu1 %v2241_v8  ;;  %v2254_v21 = vld [vmem:[%s2786_s2 + $0x8] sm:$0xff]   ;;  %v2258_v24 = vld [vmem:[%s2440_s27] sm:$0xff]   ;;  %v2264_v31 = vld [vmem:[%s2786_s2 + $0x70] sm:$0xff]  }
  0x1d   : > { %v2259_v25 = vld [vmem:[#allocation3] sm:$0xff]   ;;  %2129 = vmatprep.mubr.bf16.mxu0 %v2258_v24  ;;  %v2260_v27 = vld [vmem:[%s2440_s27 + $0x8] sm:$0xff]   ;;  %v2265_v32 = vld [vmem:[%s2786_s2 + $0x30] sm:$0xff]  }
  0x1e   : > { %2118 = vmatpush3.bf16.msra.mxu0 %v2240_v7  ;;  %v2257_v26 = vld [vmem:[%s2786_s2] sm:$0xff]   ;;  %636 = vmatprep.mubr.bf16.mxu1 %v2259_v25  ;;  %v2261_v29 = vld [vmem:[#allocation3 + $0x8] sm:$0xff]   ;;  %v2270_v37 = vld [vmem:[%s2786_s2 + $0x58] sm:$0xff]  }
  0x1f   : > { %1994 = vmatpush3.bf16.msra.mxu1 %v2242_v9  ;;  %2119 = vmatprep.subr.bf16.mxu0 %v2243_v10  ;;  %v2266_v33 = vld [vmem:[%s2786_s2 + $0x68] sm:$0xff]   ;;  %v2268_v35 = vld [vmem:[%s2786_s2 + $0x60] sm:$0xff]   ;;  %v2271_v38 = vld [vmem:[%s2440_s27 + $0x10] sm:$0xff]  }
  0x20   : > { %1995 = vmatprep.subr.bf16.mxu1 %v2244_v11  ;;  %v2267_v34 = vld [vmem:[%s2786_s2 + $0x28] sm:$0xff]   ;;  %v2269_v36 = vld [vmem:[%s2786_s2 + $0x20] sm:$0xff]   ;;  %v2272_v39 = vld [vmem:[%s2786_s2 + $0x18] sm:$0xff]  }
  0x21   : > { %v2273_v40 = vld [vmem:[%s2440_s27 + $0x18] sm:$0xff]   ;;  %v2274_v41 = vld [vmem:[%s2786_s2 + $0x50] sm:$0xff]   ;;  %v2276_v43 = vld [vmem:[%s2786_s2 + $0x48] sm:$0xff]  }
  0x22   : > { %2120 = vmatpush3.bf16.msra.mxu0 %v2243_v10  ;;  %v2275_v42 = vld [vmem:[%s2786_s2 + $0x10] sm:$0xff]   ;;  %v2277_v44 = vld [vmem:[%s2786_s2 + $0x8] sm:$0xff]   ;;  %v2278_v45 = vld [vmem:[%s2786_s2 + $0x40] sm:$0xff]  }
  0x23   : > { %1996 = vmatpush3.bf16.msra.mxu1 %v2245_v12  ;;  %2121 = vmatprep.subr.bf16.mxu0 %v2246_v13  ;;  %v2279_v46 = vld [vmem:[%s2786_s2] sm:$0xff]   ;;  %v2280_v47 = vld [vmem:[%s2786_s2 + $0x78] sm:$0xff]   ;;  %v2282_v49 = vld [vmem:[%s2786_s2 + $0x70] sm:$0xff]  }
  0x24   : > { %1997 = vmatprep.subr.bf16.mxu1 %v2247_v14  ;;  %v2281_v48 = vld [vmem:[%s2786_s2 + $0x38] sm:$0xff]   ;;  %v2283_v50 = vld [vmem:[%s2786_s2 + $0x30] sm:$0xff]   ;;  %v2588_v53 = vld [vmem:[%s2787_s3] ss:$0 sm:$0xff] }
  0x25   : > { %v2284_v5 = vld [vmem:[%s2786_s2 + $0x68] sm:$0xff]   ;;  %v2286_v7 = vld [vmem:[%s2786_s2 + $0x60] sm:$0xff]   ;;  %v2288_v9 = vld [vmem:[%s2786_s2 + $0x58] sm:$0xff]  }
  0x26   : > { %2122 = vmatpush3.bf16.msra.mxu0 %v2246_v13  ;;  %v2285_v6 = vld [vmem:[%s2786_s2 + $0x28] sm:$0xff]   ;;  %v2287_v8 = vld [vmem:[%s2786_s2 + $0x20] sm:$0xff]   ;;  %v2289_v10 = vld [vmem:[%s2786_s2 + $0x18] sm:$0xff]  }
  0x27   : > { %1998 = vmatpush3.bf16.msra.mxu1 %v2248_v15  ;;  %2123 = vmatprep.subr.bf16.mxu0 %v2249_v16  ;;  %v2290_v11 = vld [vmem:[%s2786_s2 + $0x50] sm:$0xff]   ;;  %v2292_v13 = vld [vmem:[%s2786_s2 + $0x48] sm:$0xff]   ;;  %v2294_v15 = vld [vmem:[%s2786_s2 + $0x40] sm:$0xff]  }
  0x28   : > { %1999 = vmatprep.subr.bf16.mxu1 %v2250_v17  ;;  %v2291_v12 = vld [vmem:[%s2786_s2 + $0x10] sm:$0xff]   ;;  %v2293_v14 = vld [vmem:[%s2786_s2 + $0x8] sm:$0xff]   ;;  %v2296_v17 = vld [vmem:[%s2788_s4 + $0x78] sm:$0xff]  }
  0x2a   : > { %2124 = vmatpush3.bf16.msra.mxu0 %v2249_v16  ;;  %v2295_v16 = vld [vmem:[%s2786_s2] sm:$0xff]  }
  0x2b   : > { %2000 = vmatpush3.bf16.msra.mxu1 %v2251_v18  ;;  %2125 = vmatprep.subr.bf16.mxu0 %v2252_v19  ;;  %v2307_v18 = vld [vmem:[%s2786_s2 + $0x78] sm:$0xff]  }
  0x2c   : > { %2001 = vmatprep.subr.bf16.mxu1 %v2253_v20  ;;  %v2309_v20 = vld [vmem:[%s2786_s2 + $0x70] sm:$0xff]  }
  0x2e   : > { %2126 = vmatpush3.bf16.msra.mxu0 %v2252_v19  ;;  %v2308_v19 = vld [vmem:[%s2786_s2 + $0x38] sm:$0xff]  }
  0x2f   : > { %2002 = vmatpush3.bf16.msra.mxu1 %v2254_v21  ;;  %2127 = vmatprep.subr.bf16.mxu0 %v2255_v22  ;;  %v2310_v21 = vld [vmem:[%s2786_s2 + $0x30] sm:$0xff]  }
  0x30   : > { %2003 = vmatprep.subr.bf16.mxu1 %v2256_v23 }
  0x32   : > { %2128 = vmatpush3.bf16.msra.mxu0 %v2255_v22 }
  0x33   : > { %2004 = vmatpush3.bf16.msra.mxu1 %v2257_v26  ;;  %2011 = vmatprep.subr.bf16.mxu0 %v2262_v28 }
  0x34   : > { %2033 = vmatprep.subr.bf16.mxu1 %v2280_v47 }
  0x35   : > { %2130 = vmatmul.mubr.bf16.vlgmr.msra.gmra.mxu0 %v2260_v27 }
  0x36   : > { %637 = vmatmul.mubr.bf16.vlgmr.msra.gmra.mxu1 %v2261_v29  ;;  %2012 = vmatpush3.bf16.msra.mxu0 %v2263_v30 }
  0x37   : > { %2013 = vmatprep.subr.bf16.mxu0 %v2264_v31  ;;  %2133 = vmatprep.mubr.bf16.mxu0 %v2271_v38  ;;  %v2304_v38 = vld [vmem:[#allocation3 + $0x8] sm:$0xff]  }
  0x38   : > { %2034 = vmatpush3.bf16.msra.mxu1 %v2281_v48 }
  0x39   : > { %2035 = vmatprep.subr.bf16.mxu1 %v2282_v49  ;;  %v2311_v49 = vld [vmem:[%s2786_s2 + $0x68] sm:$0xff]  }
  0x3a   : > { %2014 = vmatpush3.bf16.msra.mxu0 %v2265_v32 }
  0x3b   : > { %2015 = vmatprep.subr.bf16.mxu0 %v2266_v33 }
  0x3c   : > { %2036 = vmatpush3.bf16.msra.mxu1 %v2283_v50  ;;  %v2312_v50 = vld [vmem:[%s2786_s2 + $0x28] sm:$0xff]  }
  0x3d   : > { %2134 = vmatmul.mubr.bf16.gmra.mxu0 %v2273_v40  ;;  %2037 = vmatprep.subr.bf16.mxu1 %v2284_v5  ;;  %v2297_v40 = vld [vmem:[%s2788_s4 + $0x70] sm:$0xff]   ;;  %v2334_v5 = vld [vmem:[%s2788_s4 + $0x88] sm:$0xff]  }
  0x3e   : > { %2016 = vmatpush3.bf16.msra.mxu0 %v2267_v34  ;;  %821 = vmatprep.mubr.bf16.mxu0 %v2261_v29 }
  0x3f   : > { %2017 = vmatprep.subr.bf16.mxu0 %v2268_v35 }
  0x40   : > { %2038 = vmatpush3.bf16.msra.mxu1 %v2285_v6  ;;  %v2336_v6 = vld [vmem:[%s2788_s4 + $0x80] sm:$0xff]  }
  0x41   : > { %2039 = vmatprep.subr.bf16.mxu1 %v2286_v7 }
  0x42   : > { %2018 = vmatpush3.bf16.msra.mxu0 %v2269_v36 }
  0x43   : > { %2019 = vmatprep.subr.bf16.mxu0 %v2270_v37 }
  0x44   : > { %2040 = vmatpush3.bf16.msra.mxu1 %v2287_v8 }
  0x45   : > { %2041 = vmatprep.subr.bf16.mxu1 %v2288_v9 }
  0x46   : > { %2020 = vmatpush3.bf16.msra.mxu0 %v2272_v39 }
  0x47   : > { %2021 = vmatprep.subr.bf16.mxu0 %v2274_v41  ;;  %v2298_v41 = vld [vmem:[%s2788_s4 + $0x68] sm:$0xff]  }
  0x48   : > { %2042 = vmatpush3.bf16.msra.mxu1 %v2289_v10 }
  0x49   : > { %2043 = vmatprep.subr.bf16.mxu1 %v2290_v11 }
  0x4a   : > { %2022 = vmatpush3.bf16.msra.mxu0 %v2275_v42  ;;  %v2299_v42 = vld [vmem:[%s2788_s4 + $0x60] sm:$0xff]  }
  0x4b   : > { %2023 = vmatprep.subr.bf16.mxu0 %v2276_v43  ;;  %v2300_v43 = vld [vmem:[%s2788_s4 + $0x58] sm:$0xff]  }
  0x4c   : > { %2044 = vmatpush3.bf16.msra.mxu1 %v2291_v12 }
  0x4d   : > { %2045 = vmatprep.subr.bf16.mxu1 %v2292_v13 }
  0x4e   : > { %2024 = vmatpush3.bf16.msra.mxu0 %v2277_v44  ;;  %v2301_v44 = vld [vmem:[%s2788_s4 + $0x50] sm:$0xff]  }
  0x4f   : > { %2025 = vmatprep.subr.bf16.mxu0 %v2278_v45  ;;  %v2302_v45 = vld [vmem:[%s2788_s4 + $0x48] sm:$0xff]  }
  0x50   : > { %2046 = vmatpush3.bf16.msra.mxu1 %v2293_v14 }
  0x51   : > { %2047 = vmatprep.subr.bf16.mxu1 %v2294_v15 }
  0x52   : > { %2026 = vmatpush3.bf16.msra.mxu0 %v2279_v46  ;;  %v2303_v46 = vld [vmem:[%s2788_s4 + $0x40] sm:$0xff]  }
  0x53   : > { %2055 = vmatprep.subr.bf16.mxu0 %v2307_v18 }
  0x54   : > { %2048 = vmatpush3.bf16.msra.mxu1 %v2295_v16 }
  0x55   : > { %2137 = vmatprep.subr.bf16.mxu1 %v2296_v17 }
  0xf5   : > { %v2583_v51 = vpop.f32.mrf.mxu0 }
  0xf6   : > { %v2005_v52 = vpop.f32.mrf.mxu1  ;;  %v427_v29 = vadd.f32 %v2583_v51, %v2588_v53  ;;  %v2313_v51 = vld [vmem:[%s2786_s2 + $0x60] sm:$0xff]  }
  0xf7   : > { %v418_v54 = vpop.f32.mrf.mxu0 }
  0xf8   : > { %v419_v55 = vadd.f32 %v2588_v53, %v418_v54  ;;  %v2006_v56 = vpop.f32.mrf.mxu1  ;;  %v2315_v54 = vld [vmem:[%s2786_s2 + $0x58] sm:$0xff]  }
  0xf9   : > { %v2007_v57 = vadd.f32 %v2006_v56, %v2005_v52  ;;  %v2132_v58 = vpop.f32.mrf.mxu0  ;;  %v2314_v52 = vld [vmem:[%s2786_s2 + $0x20] sm:$0xff]   ;;  %v2317_v56 = vld [vmem:[%s2788_s4 + $0xb8] sm:$0xff]  }
  0xfa   : > { %v2008_v59 = vpop.f32.mrf.mxu1  ;;  %v430_v33 = vadd.f32 %v2132_v58, %v2588_v53  ;;  %v2319_v58 = vld [vmem:[%s2786_s2 + $0x10] sm:$0xff]  }
  0xfb   : > { %v421_v60 = vpop.f32.mrf.mxu0  ;;  %v639_v61 = vadd.f32 %v2007_v57, %v419_v55  ;;  %v2316_v55 = vld [vmem:[%s2786_s2 + $0x18] sm:$0xff]   ;;  %v2318_v57 = vld [vmem:[%s2786_s2 + $0x50] sm:$0xff]  }
  0xfc   : > { %v422_v62 = vadd.f32 %v2588_v53, %v421_v60  ;;  %v2009_v63 = vpop.f32.mrf.mxu1  ;;  %v2321_v60 = vld [vmem:[%s2786_s2 + $0x48] sm:$0xff]  }
  0xfd   : > { %v2010_v0 = vadd.f32 %v2009_v63, %v2008_v59  ;;  %2348 = vtanh.f32 %v639_v61  ;;  %v2643_v22 = vpop.f32.mrf.mxu0  ;;  %v2320_v59 = vld [vmem:[%s2788_s4 + $0xb0] sm:$0xff]   ;;  %v2323_v61 = vld [vmem:[%s2788_s4 + $0xa8] sm:$0xff]   ;;  %v2324_v63 = vld [vmem:[%s2786_s2 + $0x40] sm:$0xff]  }
  0xff   : > { %v642_v1 = vadd.f32 %v2010_v0, %v422_v62  ;;  %v2645_v23 = vpop.f32.mrf.mxu0  ;;  %v2322_v62 = vld [vmem:[%s2786_s2 + $0x8] sm:$0xff]   ;;  %v2326_v0 = vld [vmem:[%s2788_s4 + $0xa0] sm:$0xff]  }
 0x100   : > { %v435_v10 = vadd.f32 %v2588_v53, %v2645_v23  ;;  %v2332_v23 = vld [vmem:[%s2788_s4 + $0x28] sm:$0xff]  }
 0x101   : > { %2350 = vtanh.f32 %v642_v1  ;;  %v2647_v24 = vpop.f32.mrf.mxu0  ;;  %v2325_v1 = vld [vmem:[%s2786_s2] sm:$0xff]  }
 0x103   : > { %v2649_v25 = vpop.f32.mrf.mxu0 }
 0x104   : > { %v438_v14 = vadd.f32 %v2588_v53, %v2649_v25  ;;  %v2335_v25 = vld [vmem:[%s2788_s4 + $0x20] sm:$0xff]  }
 0x10a   : > { %v2349_v2 = vpop.eup %2348 }
 0x10e   : > { %v2351_v3 = vpop.eup %2350 }
 0x10f   : > { %v647_v4 = vpack.c.bf16 %v2351_v3, %v2349_v2  ;;  %v2327_v2 = vld [vmem:[%s2788_s4 + $0x38] sm:$0xff]  }
 0x110   : > { %v2329_v3 = vld [vmem:[%s2788_s4 + $0x98] sm:$0xff]  }
 0x111   : > { %1961 = vst [vmem:[#allocation3 + $0x10] sm:$0xff] %v647_v4   ;;  %822 = vmatmul.mubr.bf16.vlgmr.msra.gmra.mxu0 %v647_v4  ;;  %1006 = vmatprep.mubr.bf16.mxu1 %v647_v4  ;;  %v2331_v4 = vld [vmem:[%s2788_s4 + $0x90] sm:$0xff]  }
 0x112   : > { %2056 = vmatpush3.bf16.msra.mxu0 %v2308_v19 }
 0x113   : > { %2057 = vmatprep.subr.bf16.mxu0 %v2309_v20  ;;  %v2330_v20 = vld [vmem:[%s2788_s4 + $0x30] sm:$0xff]  }
 0x116   : > { %2058 = vmatpush3.bf16.msra.mxu0 %v2310_v21 }
 0x117   : > { %2059 = vmatprep.subr.bf16.mxu0 %v2311_v49 }
 0x118   : > { %v2305_v47 = vld [vmem:[#allocation3 + $0x10] sm:$0xff]  }
 0x119   : > { %v2328_v21 = vld [vmem:[#allocation3 + $0x10] sm:$0xff]  }
 0x11a   : > { %2060 = vmatpush3.bf16.msra.mxu0 %v2312_v50 }
 0x11b   : > { %2061 = vmatprep.subr.bf16.mxu0 %v2313_v51 }
 0x11e   : > { %2062 = vmatpush3.bf16.msra.mxu0 %v2314_v52 }
 0x11f   : > { %2063 = vmatprep.subr.bf16.mxu0 %v2315_v54 }
 0x122   : > { %2064 = vmatpush3.bf16.msra.mxu0 %v2316_v55 }
 0x123   : > { %2065 = vmatprep.subr.bf16.mxu0 %v2318_v57 }
 0x126   : > { %2066 = vmatpush3.bf16.msra.mxu0 %v2319_v58 }
 0x127   : > { %2067 = vmatprep.subr.bf16.mxu0 %v2321_v60 }
 0x12a   : > { %2068 = vmatpush3.bf16.msra.mxu0 %v2322_v62 }
 0x12b   : > { %2069 = vmatprep.subr.bf16.mxu0 %v2324_v63 }
 0x12e   : > { %2070 = vmatpush3.bf16.msra.mxu0 %v2325_v1 }
 0x12f   : > { %2161 = vmatprep.subr.bf16.mxu0 %v2327_v2 }
 0x1d1   : > { %v2027_v26 = vpop.f32.mrf.mxu0 }
 0x1d3   : > { %v2028_v27 = vpop.f32.mrf.mxu0 }
 0x1d4   : > { %v2029_v28 = vadd.f32 %v2028_v27, %v2027_v26  ;;  %v2338_v26 = vld [vmem:[#allocation3] sm:$0xff]  }
 0x1d5   : > { %v2030_v30 = vpop.f32.mrf.mxu0 }
 0x1d6   : > { %v824_v31 = vadd.f32 %v2029_v28, %v427_v29  ;;  %v2337_v29 = vld [vmem:[%s2788_s4 + $0x18] sm:$0xff]  }
 0x1d7   : > { %v2031_v32 = vpop.f32.mrf.mxu0 }
 0x1d8   : > { %v2032_v34 = vadd.f32 %v2031_v32, %v2030_v30  ;;  %2352 = vtanh.f32 %v824_v31  ;;  %v2339_v30 = vld [vmem:[#allocation3 + $0x8] sm:$0xff]   ;;  %v2340_v31 = vld [vmem:[%s2788_s4 + $0x10] sm:$0xff]  }
 0x1d9   : > { %v2341_v32 = vld [vmem:[#allocation3 + $0x10] sm:$0xff]  }
 0x1da   : > { %v827_v35 = vadd.f32 %v2032_v34, %v430_v33  ;;  %v2342_v33 = vld [vmem:[%s2788_s4 + $0x8] sm:$0xff]   ;;  %v2344_v34 = vld [vmem:[%s2788_s4] sm:$0xff]  }
 0x1dc   : > { %2354 = vtanh.f32 %v827_v35 }
 0x1e5   : > { %v2353_v36 = vpop.eup %2352 }
 0x1e9   : > { %v2355_v37 = vpop.eup %2354 }
 0x1ea   : > { %v832_v39 = vpack.c.bf16 %v2355_v37, %v2353_v36 }
 0x1ec   : > { %1966 = vst [vmem:[#allocation3 + $0x18] sm:$0xff] %v832_v39   ;;  %1007 = vmatmul.mubr.bf16.vlgmr.msra.gmra.mxu1 %v832_v39  ;;  %1191 = vmatprep.mubr.bf16.mxu0 %v832_v39 }
 0x1ed   : > { %2138 = vmatpush3.bf16.msra.mxu1 %v2296_v17  ;;  %2153 = vmatprep.mubr.bf16.mxu1 %v2304_v38 }
 0x1ee   : > { %2139 = vmatprep.subr.bf16.mxu1 %v2297_v40 }
 0x1f1   : > { %2140 = vmatpush3.bf16.msra.mxu1 %v2297_v40 }
 0x1f2   : > { %2141 = vmatprep.subr.bf16.mxu1 %v2298_v41 }
 0x1f3   : > { %v2306_v48 = vld [vmem:[#allocation3 + $0x18] sm:$0xff]  }
 0x1f4   : > { %v2343_v35 = vld [vmem:[#allocation3 + $0x18] sm:$0xff]  }
 0x1f5   : > { %2142 = vmatpush3.bf16.msra.mxu1 %v2298_v41  ;;  %v2345_v36 = vld [vmem:[#allocation3 + $0x18] sm:$0xff]  }
 0x1f6   : > { %2143 = vmatprep.subr.bf16.mxu1 %v2299_v42 }
 0x1f9   : > { %2144 = vmatpush3.bf16.msra.mxu1 %v2299_v42 }
 0x1fa   : > { %2145 = vmatprep.subr.bf16.mxu1 %v2300_v43 }
 0x1fd   : > { %2146 = vmatpush3.bf16.msra.mxu1 %v2300_v43  ;;  %v443_v43 = vadd.f32 %v2643_v22, %v2588_v53 }
 0x1fe   : > { %2147 = vmatprep.subr.bf16.mxu1 %v2301_v44 }
 0x201   : > { %2148 = vmatpush3.bf16.msra.mxu1 %v2301_v44 }
 0x202   : > { %2149 = vmatprep.subr.bf16.mxu1 %v2302_v45 }
 0x205   : > { %2150 = vmatpush3.bf16.msra.mxu1 %v2302_v45 }
 0x206   : > { %2151 = vmatprep.subr.bf16.mxu1 %v2303_v46 }
 0x209   : > { %2152 = vmatpush3.bf16.msra.mxu1 %v2303_v46 }
 0x20a   : > { %2185 = vmatprep.subr.bf16.mxu1 %v2317_v56 }
 0x20c   : > { %2154 = vmatmul.mubr.bf16.vlgmr.msra.gmra.mxu1 %v2305_v47 }
 0x20d   : > { %2157 = vmatprep.mubr.bf16.mxu1 %v2306_v48  ;;  %2186 = vmatpush3.bf16.msra.mxu1 %v2317_v56  ;;  %v446_v48 = vadd.f32 %v2647_v24, %v2588_v53 }
 0x20e   : > { %2187 = vmatprep.subr.bf16.mxu1 %v2320_v59 }
 0x211   : > { %2188 = vmatpush3.bf16.msra.mxu1 %v2320_v59 }
 0x212   : > { %2189 = vmatprep.subr.bf16.mxu1 %v2323_v61 }
 0x215   : > { %2190 = vmatpush3.bf16.msra.mxu1 %v2323_v61 }
 0x216   : > { %2191 = vmatprep.subr.bf16.mxu1 %v2326_v0 }
 0x219   : > { %2192 = vmatpush3.bf16.msra.mxu1 %v2326_v0 }
 0x21a   : > { %2193 = vmatprep.subr.bf16.mxu1 %v2329_v3 }
 0x21d   : > { %2194 = vmatpush3.bf16.msra.mxu1 %v2329_v3 }
 0x21e   : > { %2195 = vmatprep.subr.bf16.mxu1 %v2331_v4 }
 0x221   : > { %2196 = vmatpush3.bf16.msra.mxu1 %v2331_v4 }
 0x222   : > { %2197 = vmatprep.subr.bf16.mxu1 %v2334_v5 }
 0x225   : > { %2198 = vmatpush3.bf16.msra.mxu1 %v2334_v5 }
 0x226   : > { %2199 = vmatprep.subr.bf16.mxu1 %v2336_v6 }
 0x229   : > { %2200 = vmatpush3.bf16.msra.mxu1 %v2336_v6 }
 0x2ac   : > { %v2049_v7 = vpop.f32.mrf.mxu1 }
 0x2ae   : > { %v2050_v8 = vpop.f32.mrf.mxu1 }
 0x2af   : > { %v2051_v9 = vadd.f32 %v2050_v8, %v2049_v7 }
 0x2b0   : > { %v2052_v11 = vpop.f32.mrf.mxu1 }
 0x2b1   : > { %v1009_v12 = vadd.f32 %v2051_v9, %v435_v10 }
 0x2b2   : > { %v2053_v13 = vpop.f32.mrf.mxu1 }
 0x2b3   : > { %v2054_v15 = vadd.f32 %v2053_v13, %v2052_v11  ;;  %2356 = vtanh.f32 %v1009_v12 }
 0x2b5   : > { %v1012_v16 = vadd.f32 %v2054_v15, %v438_v14 }
 0x2b7   : > { %2358 = vtanh.f32 %v1012_v16 }
 0x2c0   : > { %v2357_v17 = vpop.eup %2356 }
 0x2c4   : > { %v2359_v18 = vpop.eup %2358 }
 0x2c5   : > { %v1017_v19 = vpack.c.bf16 %v2359_v18, %v2357_v17 }
 0x2c7   : > { %1971 = vst [vmem:[#allocation3 + $0x20] sm:$0xff] %v1017_v19   ;;  %1192 = vmatmul.mubr.bf16.vlgmr.msra.gmra.mxu0 %v1017_v19 }
 0x2c8   : > { %2162 = vmatpush3.bf16.msra.mxu0 %v2327_v2  ;;  %2177 = vmatprep.mubr.bf16.mxu0 %v2328_v21 }
 0x2c9   : > { %2163 = vmatprep.subr.bf16.mxu0 %v2330_v20 }
 0x2cc   : > { %2164 = vmatpush3.bf16.msra.mxu0 %v2330_v20  ;;  %v2155_v38 = vpop.f32.mrf.mxu1 }
 0x2cd   : > { %2165 = vmatprep.subr.bf16.mxu0 %v2332_v23 }
 0x2ce   : > { %v2333_v27 = vld [vmem:[#allocation3 + $0x20] sm:$0xff]   ;;  %v1367_v40 = vpop.f32.mrf.mxu1 }
 0x2cf   : > { %v1712_v28 = vld [vmem:[#allocation3 + $0x20] sm:$0xff]   ;;  %2158 = vmatmul.mubr.bf16.gmra.mxu1 %v2333_v27 }
 0x2d0   : > { %2166 = vmatpush3.bf16.msra.mxu0 %v2332_v23  ;;  %1716 = vst [vmem:[#allocation3] sm:$0xff] %v1712_v28   ;;  %2201 = vmatprep.mubr.bf16.mxu1 %v2338_v26  ;;  %v2346_v37 = vld [vmem:[#allocation3 + $0x20] sm:$0xff]   ;;  %v2156_v45 = vpop.f32.mrf.mxu1 }
 0x2d1   : > { %2167 = vmatprep.subr.bf16.mxu0 %v2335_v25 }
 0x2d2   : > { %v1370_v51 = vpop.f32.mrf.mxu1 }
 0x2d4   : > { %2168 = vmatpush3.bf16.msra.mxu0 %v2335_v25 }
 0x2d5   : > { %2169 = vmatprep.subr.bf16.mxu0 %v2337_v29 }
 0x2d7   : > { %2202 = vmatmul.mubr.bf16.vlgmr.msra.gmra.mxu1 %v2339_v30 }
 0x2d8   : > { %2170 = vmatpush3.bf16.msra.mxu0 %v2337_v29  ;;  %2205 = vmatprep.mubr.bf16.mxu1 %v2341_v32 }
 0x2d9   : > { %2171 = vmatprep.subr.bf16.mxu0 %v2340_v31 }
 0x2dc   : > { %2172 = vmatpush3.bf16.msra.mxu0 %v2340_v31 }
 0x2dd   : > { %2173 = vmatprep.subr.bf16.mxu0 %v2342_v33 }
 0x2df   : > { %2206 = vmatmul.mubr.bf16.gmra.mxu1 %v2343_v35 }
 0x2e0   : > { %2174 = vmatpush3.bf16.msra.mxu0 %v2342_v33 }
 0x2e1   : > { %2175 = vmatprep.subr.bf16.mxu0 %v2344_v34 }
 0x2e4   : > { %2176 = vmatpush3.bf16.msra.mxu0 %v2344_v34 }
 0x2e7   : > { %2178 = vmatmul.mubr.bf16.vlgmr.msra.gmra.mxu0 %v2345_v36 }
 0x2e8   : > { %2181 = vmatprep.mubr.bf16.mxu0 %v2346_v37 }
 0x387   : > { %v2071_v39 = vpop.f32.mrf.mxu0 }
 0x389   : > { %v2072_v41 = vpop.f32.mrf.mxu0 }
 0x38a   : > { %v2073_v42 = vadd.f32 %v2072_v41, %v2071_v39 }
 0x38b   : > { %v2074_v44 = vpop.f32.mrf.mxu0 }
 0x38c   : > { %v1194_v46 = vadd.f32 %v2073_v42, %v443_v43 }
 0x38d   : > { %v2075_v47 = vpop.f32.mrf.mxu0 }
 0x38e   : > { %v2076_v49 = vadd.f32 %v2075_v47, %v2074_v44  ;;  %2360 = vtanh.f32 %v1194_v46 }
 0x38f   : > { %v2159_v52 = vpop.f32.mrf.mxu1 }
 0x390   : > { %v1197_v50 = vadd.f32 %v2076_v49, %v446_v48 }
 0x391   : > { %v1383_v54 = vpop.f32.mrf.mxu1 }
 0x392   : > { %2362 = vtanh.f32 %v1197_v50 }
 0x393   : > { %v2160_v55 = vpop.f32.mrf.mxu1 }
 0x395   : > { %v1386_v58 = vpop.f32.mrf.mxu1 }
 0x397   : > { %v2203_v22 = vpop.f32.mrf.mxu1 }
 0x399   : > { %v1665_v60 = vpop.f32.mrf.mxu1 }
 0x39b   : > { %v2361_v56 = vpop.eup %2360  ;;  %v2204_v1 = vpop.f32.mrf.mxu1 }
 0x39d   : > { %v1668_v8 = vpop.f32.mrf.mxu1 }
 0x39f   : > { %v2363_v57 = vpop.eup %2362  ;;  %v2207_v11 = vpop.f32.mrf.mxu1 }
 0x3a0   : > { %v1975_v59 = vpack.c.bf16 %v2363_v57, %v2361_v56 }
 0x3a1   : > { %v1681_v12 = vpop.f32.mrf.mxu1 }
 0x3a2   : > { %1976 = vst [vmem:[#allocation3 + $0x28] sm:$0xff] %v1975_v59  }
 0x3a3   : > { %v2208_v17 = vpop.f32.mrf.mxu1 }
 0x3a5   : > { %v1684_v26 = vpop.f32.mrf.mxu1 }
 0x3a7   : > { %v2179_v61 = vpop.f32.mrf.mxu0 }
 0x3a8   : > { %v1513_v53 = vadd.f32 %v2179_v61, %v2155_v38 }
 0x3a9   : > { %v1714_v62 = vld [vmem:[#allocation3 + $0x28] sm:$0xff]   ;;  %v1504_v24 = vpop.f32.mrf.mxu0 }
 0x3aa   : > { %1718 = vst [vmem:[#allocation3 + $0x8] sm:$0xff] %v1714_v62   ;;  %v1505_v63 = vadd.f32 %v1504_v24, %v1367_v40  ;;  %v2347_v0 = vld [vmem:[#allocation3 + $0x28] sm:$0xff]   ;;  %v1698_v4 = vadd.f32 %v2203_v22, %v1513_v53 }
 0x3ab   : > { %v2180_v2 = vpop.f32.mrf.mxu0  ;;  %2182 = vmatmul.mubr.bf16.gmra.mxu0 %v2347_v0 }
 0x3ac   : > { %v1696_v3 = vadd.f32 %v1665_v60, %v1505_v63  ;;  %v1516_v5 = vadd.f32 %v2180_v2, %v2156_v45  ;;  %1706 = vst [vmem:[%s2445_s30 + $0x10] sm:$0xff] %v1698_v4 }
 0x3ad   : > { %v1507_v6 = vpop.f32.mrf.mxu0 }
 0x3ae   : > { %1704 = vst [vmem:[%s2445_s30] sm:$0xff] %v1696_v3  ;;  %v1508_v7 = vadd.f32 %v1507_v6, %v1370_v51  ;;  %v1699_v10 = vadd.f32 %v2204_v1, %v1516_v5 }
 0x3b0   : > { %v1697_v9 = vadd.f32 %v1668_v8, %v1508_v7  ;;  %1707 = vst [vmem:[%s2445_s30 + $0x18] sm:$0xff] %v1699_v10 }
 0x3b2   : > { %1705 = vst [vmem:[%s2445_s30 + $0x8] sm:$0xff] %v1697_v9 }
 0x46b   : > { %v2183_v13 = vpop.f32.mrf.mxu0 }
 0x46c   : > { %v1529_v14 = vadd.f32 %v2183_v13, %v2159_v52 }
 0x46d   : > { %v1520_v15 = vpop.f32.mrf.mxu0 }
 0x46e   : > { %v1521_v16 = vadd.f32 %v1520_v15, %v1383_v54  ;;  %v1702_v20 = vadd.f32 %v2207_v11, %v1529_v14 }
 0x46f   : > { %v2184_v18 = vpop.f32.mrf.mxu0 }
 0x470   : > { %v1700_v19 = vadd.f32 %v1681_v12, %v1521_v16  ;;  %v1532_v21 = vadd.f32 %v2184_v18, %v2160_v55  ;;  %1710 = vst [vmem:[%s2445_s30 + $0x30] sm:$0xff] %v1702_v20 }
 0x471   : > { %v1523_v23 = vpop.f32.mrf.mxu0 }
 0x472   : > { %1708 = vst [vmem:[%s2445_s30 + $0x20] sm:$0xff] %v1700_v19  ;;  %v1524_v25 = vadd.f32 %v1523_v23, %v1386_v58  ;;  %v1703_v28 = vadd.f32 %v2208_v17, %v1532_v21 }
 0x474   : > { %v1701_v27 = vadd.f32 %v1684_v26, %v1524_v25  ;;  %1711 = vst [vmem:[%s2445_s30 + $0x38] sm:$0xff] %v1703_v28 }
 0x476   : > { %1709 = vst [vmem:[%s2445_s30 + $0x28] sm:$0xff] %v1701_v27 }
 0x477 PF: > { %s15_s20 = sadd.s32 1, %s2386_s20   ;;  %s2790_s18 = smov %s2382_s19 }
 0x478   : > { %p12_p6 = scmp.ge.s32.totalorder %s15_s20, 4   ;;  %s2791_s19 = smov %s2793_s21 }
 0x47a   :  { %14 = sbr.rel (!%p12_p6) target bundleno = 2 (0x2), region = 82 }

// kernel: _unrolled_lm_impl.1
= control target key start
LH: loop header
LB: loop body
LE: loop exit
PB: predicated region body
PF: predicated region fallthrough
CT: control target
= control target key end

     0   :  { %s2419_s18 = smov 0   ;;  %s2421_s19 = smov 0   ;;  %s2784_s0 = inlined_call_operand.vmem [shape: bf16[8,16,128], index: 0, kind: input, shape index: {}]   ;;  %s2785_s1 = inlined_call_operand.vmem [shape: bf16[128,128], index: 1, kind: input, shape index: {}]   ;;  %s2786_s2 = inlined_call_operand.vmem [shape: bf16[256,128], index: 2, kind: input, shape index: {}]   ;;  %s2787_s3 = inlined_call_operand.vmem [shape: f32[1,128], index: 3, kind: input, shape index: {}]   ;;  %s2788_s4 = inlined_call_operand.vmem [shape: bf16[384,128], index: 4, kind: input, shape index: {}]   ;;  %s2789_s5 = inlined_call_operand.vmem [shape: f32[8,16,128], index: 5, kind: output, shape index: {}]  }
   0x1   :  { %s2423_s20 = smov 0  }
   0x2 LB: > { %s24_s21 = sadd.s32 1, %s2382_s19  ;;  %p1814_p0 = scmp.ge.s32.totalorder %s2386_s20, 1  ;;  %s2386_s20 = sphi %s2423_s20, %s15_s20   ;;  %s2382_s19 = sphi %s2421_s19, %s2791_s19   ;;  %s2378_s18 = sphi %s2419_s18, %s2790_s18  }
   0x3   : > { %p25_p1 = scmp.ge.s32.totalorder %s24_s21, 2  ;;  %p210_p2 = scmp.lt.s32.totalorder %s2386_s20, 3 }
   0x5   : > { %s2793_s21 = smov (%p25_p1, %s24_s21), 0  ;;  %p211_p3 = pnand %p1814_p0, %p210_p2 }
   0x6   : > { %s1815_s22 = sshll.u32 (!%p211_p3), %s2378_s18, 2  ;;  %p1821_p5 = scmp.ne.s32.totalorder (!%p211_p3), %s2378_s18, 0 }
   0x7   : > { %214 = sbr.rel (%p211_p3) target bundleno = 1143 (0x477), region = 40  ;;  %p250_p4 = scmp.lt.s32.totalorder (!%p211_p3), %s1815_s22, 7 }
   0xc   : > { %s2795_s22 = smov (!%p250_p4, %s1815_s22), 7  ;;  %276 = sbr.rel (%p1821_p5) target bundleno = 20 (0x14), region = 44 }
   0xd   : > { %s1947_s23 = sshll.u32 %s2795_s22, 3  ;;  %s1948_s24 = sshll.u32 %s2795_s22, 4 }
   0xe   : > { %s2440_s27 = scalar_lea.vmem %s2784_s0, %s1947_s23  ;;  %s2445_s30 = scalar_lea.vmem %s2789_s5, %s1948_s24 }
  0x11   : > { %v2388_v0 = vmov 0  }
  0x12   : > { %277 = vst [vmem:[#allocation3] sm:$0xf] %v2388_v0  ;;  %278 = vst [vmem:[#allocation3 + $0x4] sm:$0xf] %v2388_v0 }
  0x13   : > { %279 = vst [vmem:[#allocation3 + $0x8] sm:$0xf] %v2388_v0  ;;  %280 = vst [vmem:[#allocation3 + $0xc] sm:$0xf] %v2388_v0 }
  0x14 PF: > { %v2234_v1 = vld [vmem:[%s2785_s1 + $0x38] sm:$0xff]   ;;  %v2237_v4 = vld [vmem:[%s2785_s1 + $0x30] sm:$0xff]   ;;  %v2240_v7 = vld [vmem:[%s2785_s1 + $0x28] sm:$0xff]  }
  0x15   : > { %v2235_v2 = vld [vmem:[%s2786_s2 + $0x78] sm:$0xff]   ;;  %2113 = vmatprep.subr.bf16.mxu0 %v2234_v1  ;;  %v2238_v5 = vld [vmem:[%s2786_s2 + $0x70] sm:$0xff]   ;;  %v2241_v8 = vld [vmem:[%s2786_s2 + $0x68] sm:$0xff]  }
  0x16   : > { %v2236_v3 = vld [vmem:[%s2786_s2 + $0x38] sm:$0xff]   ;;  %1989 = vmatprep.subr.bf16.mxu1 %v2235_v2  ;;  %2114 = vmatpush3.bf16.msra.mxu0 %v2234_v1  ;;  %v2239_v6 = vld [vmem:[%s2786_s2 + $0x30] sm:$0xff]   ;;  %v2242_v9 = vld [vmem:[%s2786_s2 + $0x28] sm:$0xff]  }
  0x17   : > { %1990 = vmatpush3.bf16.msra.mxu1 %v2236_v3  ;;  %2115 = vmatprep.subr.bf16.mxu0 %v2237_v4  ;;  %v2243_v10 = vld [vmem:[%s2785_s1 + $0x20] sm:$0xff]   ;;  %v2246_v13 = vld [vmem:[%s2785_s1 + $0x18] sm:$0xff]   ;;  %v2249_v16 = vld [vmem:[%s2785_s1 + $0x10] sm:$0xff]  }
  0x18   : > { %1991 = vmatprep.subr.bf16.mxu1 %v2238_v5  ;;  %v2244_v11 = vld [vmem:[%s2786_s2 + $0x60] sm:$0xff]   ;;  %v2247_v14 = vld [vmem:[%s2786_s2 + $0x58] sm:$0xff]   ;;  %v2250_v17 = vld [vmem:[%s2786_s2 + $0x50] sm:$0xff]  }
  0x19   : > { %v2245_v12 = vld [vmem:[%s2786_s2 + $0x20] sm:$0xff]   ;;  %v2248_v15 = vld [vmem:[%s2786_s2 + $0x18] sm:$0xff]   ;;  %v2251_v18 = vld [vmem:[%s2786_s2 + $0x10] sm:$0xff]  }
  0x1a   : > { %2116 = vmatpush3.bf16.msra.mxu0 %v2237_v4  ;;  %v2252_v19 = vld [vmem:[%s2785_s1 + $0x8] sm:$0xff]   ;;  %v2255_v22 = vld [vmem:[%s2785_s1] sm:$0xff]   ;;  %v2262_v28 = vld [vmem:[%s2786_s2 + $0x78] sm:$0xff]  }
  0x1b   : > { %1992 = vmatpush3.bf16.msra.mxu1 %v2239_v6  ;;  %2117 = vmatprep.subr.bf16.mxu0 %v2240_v7  ;;  %v2253_v20 = vld [vmem:[%s2786_s2 + $0x48] sm:$0xff]   ;;  %v2256_v23 = vld [vmem:[%s2786_s2 + $0x40] sm:$0xff]   ;;  %v2263_v30 = vld [vmem:[%s2786_s2 + $0x38] sm:$0xff]  }
  0x1c   : > { %1993 = vmatprep.subr.bf16.mxu1 %v2241_v8  ;;  %v2254_v21 = vld [vmem:[%s2786_s2 + $0x8] sm:$0xff]   ;;  %v2258_v24 = vld [vmem:[%s2440_s27] sm:$0xff]   ;;  %v2264_v31 = vld [vmem:[%s2786_s2 + $0x70] sm:$0xff]  }
  0x1d   : > { %v2259_v25 = vld [vmem:[#allocation3] sm:$0xff]   ;;  %2129 = vmatprep.mubr.bf16.mxu0 %v2258_v24  ;;  %v2260_v27 = vld [vmem:[%s2440_s27 + $0x8] sm:$0xff]   ;;  %v2265_v32 = vld [vmem:[%s2786_s2 + $0x30] sm:$0xff]  }
  0x1e   : > { %2118 = vmatpush3.bf16.msra.mxu0 %v2240_v7  ;;  %v2257_v26 = vld [vmem:[%s2786_s2] sm:$0xff]   ;;  %636 = vmatprep.mubr.bf16.mxu1 %v2259_v25  ;;  %v2261_v29 = vld [vmem:[#allocation3 + $0x8] sm:$0xff]   ;;  %v2270_v37 = vld [vmem:[%s2786_s2 + $0x58] sm:$0xff]  }
  0x1f   : > { %1994 = vmatpush3.bf16.msra.mxu1 %v2242_v9  ;;  %2119 = vmatprep.subr.bf16.mxu0 %v2243_v10  ;;  %v2266_v33 = vld [vmem:[%s2786_s2 + $0x68] sm:$0xff]   ;;  %v2268_v35 = vld [vmem:[%s2786_s2 + $0x60] sm:$0xff]   ;;  %v2271_v38 = vld [vmem:[%s2440_s27 + $0x10] sm:$0xff]  }
  0x20   : > { %1995 = vmatprep.subr.bf16.mxu1 %v2244_v11  ;;  %v2267_v34 = vld [vmem:[%s2786_s2 + $0x28] sm:$0xff]   ;;  %v2269_v36 = vld [vmem:[%s2786_s2 + $0x20] sm:$0xff]   ;;  %v2272_v39 = vld [vmem:[%s2786_s2 + $0x18] sm:$0xff]  }
  0x21   : > { %v2273_v40 = vld [vmem:[%s2440_s27 + $0x18] sm:$0xff]   ;;  %v2274_v41 = vld [vmem:[%s2786_s2 + $0x50] sm:$0xff]   ;;  %v2276_v43 = vld [vmem:[%s2786_s2 + $0x48] sm:$0xff]  }
  0x22   : > { %2120 = vmatpush3.bf16.msra.mxu0 %v2243_v10  ;;  %v2275_v42 = vld [vmem:[%s2786_s2 + $0x10] sm:$0xff]   ;;  %v2277_v44 = vld [vmem:[%s2786_s2 + $0x8] sm:$0xff]   ;;  %v2278_v45 = vld [vmem:[%s2786_s2 + $0x40] sm:$0xff]  }
  0x23   : > { %1996 = vmatpush3.bf16.msra.mxu1 %v2245_v12  ;;  %2121 = vmatprep.subr.bf16.mxu0 %v2246_v13  ;;  %v2279_v46 = vld [vmem:[%s2786_s2] sm:$0xff]   ;;  %v2280_v47 = vld [vmem:[%s2786_s2 + $0x78] sm:$0xff]   ;;  %v2282_v49 = vld [vmem:[%s2786_s2 + $0x70] sm:$0xff]  }
  0x24   : > { %1997 = vmatprep.subr.bf16.mxu1 %v2247_v14  ;;  %v2281_v48 = vld [vmem:[%s2786_s2 + $0x38] sm:$0xff]   ;;  %v2283_v50 = vld [vmem:[%s2786_s2 + $0x30] sm:$0xff]   ;;  %v2588_v53 = vld [vmem:[%s2787_s3] ss:$0 sm:$0xff] }
  0x25   : > { %v2284_v5 = vld [vmem:[%s2786_s2 + $0x68] sm:$0xff]   ;;  %v2286_v7 = vld [vmem:[%s2786_s2 + $0x60] sm:$0xff]   ;;  %v2288_v9 = vld [vmem:[%s2786_s2 + $0x58] sm:$0xff]  }
  0x26   : > { %2122 = vmatpush3.bf16.msra.mxu0 %v2246_v13  ;;  %v2285_v6 = vld [vmem:[%s2786_s2 + $0x28] sm:$0xff]   ;;  %v2287_v8 = vld [vmem:[%s2786_s2 + $0x20] sm:$0xff]   ;;  %v2289_v10 = vld [vmem:[%s2786_s2 + $0x18] sm:$0xff]  }
  0x27   : > { %1998 = vmatpush3.bf16.msra.mxu1 %v2248_v15  ;;  %2123 = vmatprep.subr.bf16.mxu0 %v2249_v16  ;;  %v2290_v11 = vld [vmem:[%s2786_s2 + $0x50] sm:$0xff]   ;;  %v2292_v13 = vld [vmem:[%s2786_s2 + $0x48] sm:$0xff]   ;;  %v2294_v15 = vld [vmem:[%s2786_s2 + $0x40] sm:$0xff]  }
  0x28   : > { %1999 = vmatprep.subr.bf16.mxu1 %v2250_v17  ;;  %v2291_v12 = vld [vmem:[%s2786_s2 + $0x10] sm:$0xff]   ;;  %v2293_v14 = vld [vmem:[%s2786_s2 + $0x8] sm:$0xff]   ;;  %v2296_v17 = vld [vmem:[%s2788_s4 + $0x78] sm:$0xff]  }
  0x2a   : > { %2124 = vmatpush3.bf16.msra.mxu0 %v2249_v16  ;;  %v2295_v16 = vld [vmem:[%s2786_s2] sm:$0xff]  }
  0x2b   : > { %2000 = vmatpush3.bf16.msra.mxu1 %v2251_v18  ;;  %2125 = vmatprep.subr.bf16.mxu0 %v2252_v19  ;;  %v2307_v18 = vld [vmem:[%s2786_s2 + $0x78] sm:$0xff]  }
  0x2c   : > { %2001 = vmatprep.subr.bf16.mxu1 %v2253_v20  ;;  %v2309_v20 = vld [vmem:[%s2786_s2 + $0x70] sm:$0xff]  }
  0x2e   : > { %2126 = vmatpush3.bf16.msra.mxu0 %v2252_v19  ;;  %v2308_v19 = vld [vmem:[%s2786_s2 + $0x38] sm:$0xff]  }
  0x2f   : > { %2002 = vmatpush3.bf16.msra.mxu1 %v2254_v21  ;;  %2127 = vmatprep.subr.bf16.mxu0 %v2255_v22  ;;  %v2310_v21 = vld [vmem:[%s2786_s2 + $0x30] sm:$0xff]  }
  0x30   : > { %2003 = vmatprep.subr.bf16.mxu1 %v2256_v23 }
  0x32   : > { %2128 = vmatpush3.bf16.msra.mxu0 %v2255_v22 }
  0x33   : > { %2004 = vmatpush3.bf16.msra.mxu1 %v2257_v26  ;;  %2011 = vmatprep.subr.bf16.mxu0 %v2262_v28 }
  0x34   : > { %2033 = vmatprep.subr.bf16.mxu1 %v2280_v47 }
  0x35   : > { %2130 = vmatmul.mubr.bf16.vlgmr.msra.gmra.mxu0 %v2260_v27 }
  0x36   : > { %637 = vmatmul.mubr.bf16.vlgmr.msra.gmra.mxu1 %v2261_v29  ;;  %2012 = vmatpush3.bf16.msra.mxu0 %v2263_v30 }
  0x37   : > { %2013 = vmatprep.subr.bf16.mxu0 %v2264_v31  ;;  %2133 = vmatprep.mubr.bf16.mxu0 %v2271_v38  ;;  %v2304_v38 = vld [vmem:[#allocation3 + $0x8] sm:$0xff]  }
  0x38   : > { %2034 = vmatpush3.bf16.msra.mxu1 %v2281_v48 }
  0x39   : > { %2035 = vmatprep.subr.bf16.mxu1 %v2282_v49  ;;  %v2311_v49 = vld [vmem:[%s2786_s2 + $0x68] sm:$0xff]  }
  0x3a   : > { %2014 = vmatpush3.bf16.msra.mxu0 %v2265_v32 }
  0x3b   : > { %2015 = vmatprep.subr.bf16.mxu0 %v2266_v33 }
  0x3c   : > { %2036 = vmatpush3.bf16.msra.mxu1 %v2283_v50  ;;  %v2312_v50 = vld [vmem:[%s2786_s2 + $0x28] sm:$0xff]  }
  0x3d   : > { %2134 = vmatmul.mubr.bf16.gmra.mxu0 %v2273_v40  ;;  %2037 = vmatprep.subr.bf16.mxu1 %v2284_v5  ;;  %v2297_v40 = vld [vmem:[%s2788_s4 + $0x70] sm:$0xff]   ;;  %v2334_v5 = vld [vmem:[%s2788_s4 + $0x88] sm:$0xff]  }
  0x3e   : > { %2016 = vmatpush3.bf16.msra.mxu0 %v2267_v34  ;;  %821 = vmatprep.mubr.bf16.mxu0 %v2261_v29 }
  0x3f   : > { %2017 = vmatprep.subr.bf16.mxu0 %v2268_v35 }
  0x40   : > { %2038 = vmatpush3.bf16.msra.mxu1 %v2285_v6  ;;  %v2336_v6 = vld [vmem:[%s2788_s4 + $0x80] sm:$0xff]  }
  0x41   : > { %2039 = vmatprep.subr.bf16.mxu1 %v2286_v7 }
  0x42   : > { %2018 = vmatpush3.bf16.msra.mxu0 %v2269_v36 }
  0x43   : > { %2019 = vmatprep.subr.bf16.mxu0 %v2270_v37 }
  0x44   : > { %2040 = vmatpush3.bf16.msra.mxu1 %v2287_v8 }
  0x45   : > { %2041 = vmatprep.subr.bf16.mxu1 %v2288_v9 }
  0x46   : > { %2020 = vmatpush3.bf16.msra.mxu0 %v2272_v39 }
  0x47   : > { %2021 = vmatprep.subr.bf16.mxu0 %v2274_v41  ;;  %v2298_v41 = vld [vmem:[%s2788_s4 + $0x68] sm:$0xff]  }
  0x48   : > { %2042 = vmatpush3.bf16.msra.mxu1 %v2289_v10 }
  0x49   : > { %2043 = vmatprep.subr.bf16.mxu1 %v2290_v11 }
  0x4a   : > { %2022 = vmatpush3.bf16.msra.mxu0 %v2275_v42  ;;  %v2299_v42 = vld [vmem:[%s2788_s4 + $0x60] sm:$0xff]  }
  0x4b   : > { %2023 = vmatprep.subr.bf16.mxu0 %v2276_v43  ;;  %v2300_v43 = vld [vmem:[%s2788_s4 + $0x58] sm:$0xff]  }
  0x4c   : > { %2044 = vmatpush3.bf16.msra.mxu1 %v2291_v12 }
  0x4d   : > { %2045 = vmatprep.subr.bf16.mxu1 %v2292_v13 }
  0x4e   : > { %2024 = vmatpush3.bf16.msra.mxu0 %v2277_v44  ;;  %v2301_v44 = vld [vmem:[%s2788_s4 + $0x50] sm:$0xff]  }
  0x4f   : > { %2025 = vmatprep.subr.bf16.mxu0 %v2278_v45  ;;  %v2302_v45 = vld [vmem:[%s2788_s4 + $0x48] sm:$0xff]  }
  0x50   : > { %2046 = vmatpush3.bf16.msra.mxu1 %v2293_v14 }
  0x51   : > { %2047 = vmatprep.subr.bf16.mxu1 %v2294_v15 }
  0x52   : > { %2026 = vmatpush3.bf16.msra.mxu0 %v2279_v46  ;;  %v2303_v46 = vld [vmem:[%s2788_s4 + $0x40] sm:$0xff]  }
  0x53   : > { %2055 = vmatprep.subr.bf16.mxu0 %v2307_v18 }
  0x54   : > { %2048 = vmatpush3.bf16.msra.mxu1 %v2295_v16 }
  0x55   : > { %2137 = vmatprep.subr.bf16.mxu1 %v2296_v17 }
  0xf5   : > { %v2583_v51 = vpop.f32.mrf.mxu0 }
  0xf6   : > { %v2005_v52 = vpop.f32.mrf.mxu1  ;;  %v427_v29 = vadd.f32 %v2583_v51, %v2588_v53  ;;  %v2313_v51 = vld [vmem:[%s2786_s2 + $0x60] sm:$0xff]  }
  0xf7   : > { %v418_v54 = vpop.f32.mrf.mxu0 }
  0xf8   : > { %v419_v55 = vadd.f32 %v2588_v53, %v418_v54  ;;  %v2006_v56 = vpop.f32.mrf.mxu1  ;;  %v2315_v54 = vld [vmem:[%s2786_s2 + $0x58] sm:$0xff]  }
  0xf9   : > { %v2007_v57 = vadd.f32 %v2006_v56, %v2005_v52  ;;  %v2132_v58 = vpop.f32.mrf.mxu0  ;;  %v2314_v52 = vld [vmem:[%s2786_s2 + $0x20] sm:$0xff]   ;;  %v2317_v56 = vld [vmem:[%s2788_s4 + $0xb8] sm:$0xff]  }
  0xfa   : > { %v2008_v59 = vpop.f32.mrf.mxu1  ;;  %v430_v33 = vadd.f32 %v2132_v58, %v2588_v53  ;;  %v2319_v58 = vld [vmem:[%s2786_s2 + $0x10] sm:$0xff]  }
  0xfb   : > { %v421_v60 = vpop.f32.mrf.mxu0  ;;  %v639_v61 = vadd.f32 %v2007_v57, %v419_v55  ;;  %v2316_v55 = vld [vmem:[%s2786_s2 + $0x18] sm:$0xff]   ;;  %v2318_v57 = vld [vmem:[%s2786_s2 + $0x50] sm:$0xff]  }
  0xfc   : > { %v422_v62 = vadd.f32 %v2588_v53, %v421_v60  ;;  %v2009_v63 = vpop.f32.mrf.mxu1  ;;  %v2321_v60 = vld [vmem:[%s2786_s2 + $0x48] sm:$0xff]  }
  0xfd   : > { %v2010_v0 = vadd.f32 %v2009_v63, %v2008_v59  ;;  %2348 = vtanh.f32 %v639_v61  ;;  %v2643_v22 = vpop.f32.mrf.mxu0  ;;  %v2320_v59 = vld [vmem:[%s2788_s4 + $0xb0] sm:$0xff]   ;;  %v2323_v61 = vld [vmem:[%s2788_s4 + $0xa8] sm:$0xff]   ;;  %v2324_v63 = vld [vmem:[%s2786_s2 + $0x40] sm:$0xff]  }
  0xff   : > { %v642_v1 = vadd.f32 %v2010_v0, %v422_v62  ;;  %v2645_v23 = vpop.f32.mrf.mxu0  ;;  %v2322_v62 = vld [vmem:[%s2786_s2 + $0x8] sm:$0xff]   ;;  %v2326_v0 = vld [vmem:[%s2788_s4 + $0xa0] sm:$0xff]  }
 0x100   : > { %v435_v10 = vadd.f32 %v2588_v53, %v2645_v23  ;;  %v2332_v23 = vld [vmem:[%s2788_s4 + $0x28] sm:$0xff]  }
 0x101   : > { %2350 = vtanh.f32 %v642_v1  ;;  %v2647_v24 = vpop.f32.mrf.mxu0  ;;  %v2325_v1 = vld [vmem:[%s2786_s2] sm:$0xff]  }
 0x103   : > { %v2649_v25 = vpop.f32.mrf.mxu0 }
 0x104   : > { %v438_v14 = vadd.f32 %v2588_v53, %v2649_v25  ;;  %v2335_v25 = vld [vmem:[%s2788_s4 + $0x20] sm:$0xff]  }
 0x10a   : > { %v2349_v2 = vpop.eup %2348 }
 0x10e   : > { %v2351_v3 = vpop.eup %2350 }
 0x10f   : > { %v647_v4 = vpack.c.bf16 %v2351_v3, %v2349_v2  ;;  %v2327_v2 = vld [vmem:[%s2788_s4 + $0x38] sm:$0xff]  }
 0x110   : > { %v2329_v3 = vld [vmem:[%s2788_s4 + $0x98] sm:$0xff]  }
 0x111   : > { %1961 = vst [vmem:[#allocation3 + $0x10] sm:$0xff] %v647_v4   ;;  %822 = vmatmul.mubr.bf16.vlgmr.msra.gmra.mxu0 %v647_v4  ;;  %1006 = vmatprep.mubr.bf16.mxu1 %v647_v4  ;;  %v2331_v4 = vld [vmem:[%s2788_s4 + $0x90] sm:$0xff]  }
 0x112   : > { %2056 = vmatpush3.bf16.msra.mxu0 %v2308_v19 }
 0x113   : > { %2057 = vmatprep.subr.bf16.mxu0 %v2309_v20  ;;  %v2330_v20 = vld [vmem:[%s2788_s4 + $0x30] sm:$0xff]  }
 0x116   : > { %2058 = vmatpush3.bf16.msra.mxu0 %v2310_v21 }
 0x117   : > { %2059 = vmatprep.subr.bf16.mxu0 %v2311_v49 }
 0x118   : > { %v2305_v47 = vld [vmem:[#allocation3 + $0x10] sm:$0xff]  }
 0x119   : > { %v2328_v21 = vld [vmem:[#allocation3 + $0x10] sm:$0xff]  }
 0x11a   : > { %2060 = vmatpush3.bf16.msra.mxu0 %v2312_v50 }
 0x11b   : > { %2061 = vmatprep.subr.bf16.mxu0 %v2313_v51 }
 0x11e   : > { %2062 = vmatpush3.bf16.msra.mxu0 %v2314_v52 }
 0x11f   : > { %2063 = vmatprep.subr.bf16.mxu0 %v2315_v54 }
 0x122   : > { %2064 = vmatpush3.bf16.msra.mxu0 %v2316_v55 }
 0x123   : > { %2065 = vmatprep.subr.bf16.mxu0 %v2318_v57 }
 0x126   : > { %2066 = vmatpush3.bf16.msra.mxu0 %v2319_v58 }
 0x127   : > { %2067 = vmatprep.subr.bf16.mxu0 %v2321_v60 }
 0x12a   : > { %2068 = vmatpush3.bf16.msra.mxu0 %v2322_v62 }
 0x12b   : > { %2069 = vmatprep.subr.bf16.mxu0 %v2324_v63 }
 0x12e   : > { %2070 = vmatpush3.bf16.msra.mxu0 %v2325_v1 }
 0x12f   : > { %2161 = vmatprep.subr.bf16.mxu0 %v2327_v2 }
 0x1d1   : > { %v2027_v26 = vpop.f32.mrf.mxu0 }
 0x1d3   : > { %v2028_v27 = vpop.f32.mrf.mxu0 }
 0x1d4   : > { %v2029_v28 = vadd.f32 %v2028_v27, %v2027_v26  ;;  %v2338_v26 = vld [vmem:[#allocation3] sm:$0xff]  }
 0x1d5   : > { %v2030_v30 = vpop.f32.mrf.mxu0 }
 0x1d6   : > { %v824_v31 = vadd.f32 %v2029_v28, %v427_v29  ;;  %v2337_v29 = vld [vmem:[%s2788_s4 + $0x18] sm:$0xff]  }
 0x1d7   : > { %v2031_v32 = vpop.f32.mrf.mxu0 }
 0x1d8   : > { %v2032_v34 = vadd.f32 %v2031_v32, %v2030_v30  ;;  %2352 = vtanh.f32 %v824_v31  ;;  %v2339_v30 = vld [vmem:[#allocation3 + $0x8] sm:$0xff]   ;;  %v2340_v31 = vld [vmem:[%s2788_s4 + $0x10] sm:$0xff]  }
 0x1d9   : > { %v2341_v32 = vld [vmem:[#allocation3 + $0x10] sm:$0xff]  }
 0x1da   : > { %v827_v35 = vadd.f32 %v2032_v34, %v430_v33  ;;  %v2342_v33 = vld [vmem:[%s2788_s4 + $0x8] sm:$0xff]   ;;  %v2344_v34 = vld [vmem:[%s2788_s4] sm:$0xff]  }
 0x1dc   : > { %2354 = vtanh.f32 %v827_v35 }
 0x1e5   : > { %v2353_v36 = vpop.eup %2352 }
 0x1e9   : > { %v2355_v37 = vpop.eup %2354 }
 0x1ea   : > { %v832_v39 = vpack.c.bf16 %v2355_v37, %v2353_v36 }
 0x1ec   : > { %1966 = vst [vmem:[#allocation3 + $0x18] sm:$0xff] %v832_v39   ;;  %1007 = vmatmul.mubr.bf16.vlgmr.msra.gmra.mxu1 %v832_v39  ;;  %1191 = vmatprep.mubr.bf16.mxu0 %v832_v39 }
 0x1ed   : > { %2138 = vmatpush3.bf16.msra.mxu1 %v2296_v17  ;;  %2153 = vmatprep.mubr.bf16.mxu1 %v2304_v38 }
 0x1ee   : > { %2139 = vmatprep.subr.bf16.mxu1 %v2297_v40 }
 0x1f1   : > { %2140 = vmatpush3.bf16.msra.mxu1 %v2297_v40 }
 0x1f2   : > { %2141 = vmatprep.subr.bf16.mxu1 %v2298_v41 }
 0x1f3   : > { %v2306_v48 = vld [vmem:[#allocation3 + $0x18] sm:$0xff]  }
 0x1f4   : > { %v2343_v35 = vld [vmem:[#allocation3 + $0x18] sm:$0xff]  }
 0x1f5   : > { %2142 = vmatpush3.bf16.msra.mxu1 %v2298_v41  ;;  %v2345_v36 = vld [vmem:[#allocation3 + $0x18] sm:$0xff]  }
 0x1f6   : > { %2143 = vmatprep.subr.bf16.mxu1 %v2299_v42 }
 0x1f9   : > { %2144 = vmatpush3.bf16.msra.mxu1 %v2299_v42 }
 0x1fa   : > { %2145 = vmatprep.subr.bf16.mxu1 %v2300_v43 }
 0x1fd   : > { %2146 = vmatpush3.bf16.msra.mxu1 %v2300_v43  ;;  %v443_v43 = vadd.f32 %v2643_v22, %v2588_v53 }
 0x1fe   : > { %2147 = vmatprep.subr.bf16.mxu1 %v2301_v44 }
 0x201   : > { %2148 = vmatpush3.bf16.msra.mxu1 %v2301_v44 }
 0x202   : > { %2149 = vmatprep.subr.bf16.mxu1 %v2302_v45 }
 0x205   : > { %2150 = vmatpush3.bf16.msra.mxu1 %v2302_v45 }
 0x206   : > { %2151 = vmatprep.subr.bf16.mxu1 %v2303_v46 }
 0x209   : > { %2152 = vmatpush3.bf16.msra.mxu1 %v2303_v46 }
 0x20a   : > { %2185 = vmatprep.subr.bf16.mxu1 %v2317_v56 }
 0x20c   : > { %2154 = vmatmul.mubr.bf16.vlgmr.msra.gmra.mxu1 %v2305_v47 }
 0x20d   : > { %2157 = vmatprep.mubr.bf16.mxu1 %v2306_v48  ;;  %2186 = vmatpush3.bf16.msra.mxu1 %v2317_v56  ;;  %v446_v48 = vadd.f32 %v2647_v24, %v2588_v53 }
 0x20e   : > { %2187 = vmatprep.subr.bf16.mxu1 %v2320_v59 }
 0x211   : > { %2188 = vmatpush3.bf16.msra.mxu1 %v2320_v59 }
 0x212   : > { %2189 = vmatprep.subr.bf16.mxu1 %v2323_v61 }
 0x215   : > { %2190 = vmatpush3.bf16.msra.mxu1 %v2323_v61 }
 0x216   : > { %2191 = vmatprep.subr.bf16.mxu1 %v2326_v0 }
 0x219   : > { %2192 = vmatpush3.bf16.msra.mxu1 %v2326_v0 }
 0x21a   : > { %2193 = vmatprep.subr.bf16.mxu1 %v2329_v3 }
 0x21d   : > { %2194 = vmatpush3.bf16.msra.mxu1 %v2329_v3 }
 0x21e   : > { %2195 = vmatprep.subr.bf16.mxu1 %v2331_v4 }
 0x221   : > { %2196 = vmatpush3.bf16.msra.mxu1 %v2331_v4 }
 0x222   : > { %2197 = vmatprep.subr.bf16.mxu1 %v2334_v5 }
 0x225   : > { %2198 = vmatpush3.bf16.msra.mxu1 %v2334_v5 }
 0x226   : > { %2199 = vmatprep.subr.bf16.mxu1 %v2336_v6 }
 0x229   : > { %2200 = vmatpush3.bf16.msra.mxu1 %v2336_v6 }
 0x2ac   : > { %v2049_v7 = vpop.f32.mrf.mxu1 }
 0x2ae   : > { %v2050_v8 = vpop.f32.mrf.mxu1 }
 0x2af   : > { %v2051_v9 = vadd.f32 %v2050_v8, %v2049_v7 }
 0x2b0   : > { %v2052_v11 = vpop.f32.mrf.mxu1 }
 0x2b1   : > { %v1009_v12 = vadd.f32 %v2051_v9, %v435_v10 }
 0x2b2   : > { %v2053_v13 = vpop.f32.mrf.mxu1 }
 0x2b3   : > { %v2054_v15 = vadd.f32 %v2053_v13, %v2052_v11  ;;  %2356 = vtanh.f32 %v1009_v12 }
 0x2b5   : > { %v1012_v16 = vadd.f32 %v2054_v15, %v438_v14 }
 0x2b7   : > { %2358 = vtanh.f32 %v1012_v16 }
 0x2c0   : > { %v2357_v17 = vpop.eup %2356 }
 0x2c4   : > { %v2359_v18 = vpop.eup %2358 }
 0x2c5   : > { %v1017_v19 = vpack.c.bf16 %v2359_v18, %v2357_v17 }
 0x2c7   : > { %1971 = vst [vmem:[#allocation3 + $0x20] sm:$0xff] %v1017_v19   ;;  %1192 = vmatmul.mubr.bf16.vlgmr.msra.gmra.mxu0 %v1017_v19 }
 0x2c8   : > { %2162 = vmatpush3.bf16.msra.mxu0 %v2327_v2  ;;  %2177 = vmatprep.mubr.bf16.mxu0 %v2328_v21 }
 0x2c9   : > { %2163 = vmatprep.subr.bf16.mxu0 %v2330_v20 }
 0x2cc   : > { %2164 = vmatpush3.bf16.msra.mxu0 %v2330_v20  ;;  %v2155_v38 = vpop.f32.mrf.mxu1 }
 0x2cd   : > { %2165 = vmatprep.subr.bf16.mxu0 %v2332_v23 }
 0x2ce   : > { %v2333_v27 = vld [vmem:[#allocation3 + $0x20] sm:$0xff]   ;;  %v1367_v40 = vpop.f32.mrf.mxu1 }
 0x2cf   : > { %v1712_v28 = vld [vmem:[#allocation3 + $0x20] sm:$0xff]   ;;  %2158 = vmatmul.mubr.bf16.gmra.mxu1 %v2333_v27 }
 0x2d0   : > { %2166 = vmatpush3.bf16.msra.mxu0 %v2332_v23  ;;  %1716 = vst [vmem:[#allocation3] sm:$0xff] %v1712_v28   ;;  %2201 = vmatprep.mubr.bf16.mxu1 %v2338_v26  ;;  %v2346_v37 = vld [vmem:[#allocation3 + $0x20] sm:$0xff]   ;;  %v2156_v45 = vpop.f32.mrf.mxu1 }
 0x2d1   : > { %2167 = vmatprep.subr.bf16.mxu0 %v2335_v25 }
 0x2d2   : > { %v1370_v51 = vpop.f32.mrf.mxu1 }
 0x2d4   : > { %2168 = vmatpush3.bf16.msra.mxu0 %v2335_v25 }
 0x2d5   : > { %2169 = vmatprep.subr.bf16.mxu0 %v2337_v29 }
 0x2d7   : > { %2202 = vmatmul.mubr.bf16.vlgmr.msra.gmra.mxu1 %v2339_v30 }
 0x2d8   : > { %2170 = vmatpush3.bf16.msra.mxu0 %v2337_v29  ;;  %2205 = vmatprep.mubr.bf16.mxu1 %v2341_v32 }
 0x2d9   : > { %2171 = vmatprep.subr.bf16.mxu0 %v2340_v31 }
 0x2dc   : > { %2172 = vmatpush3.bf16.msra.mxu0 %v2340_v31 }
 0x2dd   : > { %2173 = vmatprep.subr.bf16.mxu0 %v2342_v33 }
 0x2df   : > { %2206 = vmatmul.mubr.bf16.gmra.mxu1 %v2343_v35 }
 0x2e0   : > { %2174 = vmatpush3.bf16.msra.mxu0 %v2342_v33 }
 0x2e1   : > { %2175 = vmatprep.subr.bf16.mxu0 %v2344_v34 }
 0x2e4   : > { %2176 = vmatpush3.bf16.msra.mxu0 %v2344_v34 }
 0x2e7   : > { %2178 = vmatmul.mubr.bf16.vlgmr.msra.gmra.mxu0 %v2345_v36 }
 0x2e8   : > { %2181 = vmatprep.mubr.bf16.mxu0 %v2346_v37 }
 0x387   : > { %v2071_v39 = vpop.f32.mrf.mxu0 }
 0x389   : > { %v2072_v41 = vpop.f32.mrf.mxu0 }
 0x38a   : > { %v2073_v42 = vadd.f32 %v2072_v41, %v2071_v39 }
 0x38b   : > { %v2074_v44 = vpop.f32.mrf.mxu0 }
 0x38c   : > { %v1194_v46 = vadd.f32 %v2073_v42, %v443_v43 }
 0x38d   : > { %v2075_v47 = vpop.f32.mrf.mxu0 }
 0x38e   : > { %v2076_v49 = vadd.f32 %v2075_v47, %v2074_v44  ;;  %2360 = vtanh.f32 %v1194_v46 }
 0x38f   : > { %v2159_v52 = vpop.f32.mrf.mxu1 }
 0x390   : > { %v1197_v50 = vadd.f32 %v2076_v49, %v446_v48 }
 0x391   : > { %v1383_v54 = vpop.f32.mrf.mxu1 }
 0x392   : > { %2362 = vtanh.f32 %v1197_v50 }
 0x393   : > { %v2160_v55 = vpop.f32.mrf.mxu1 }
 0x395   : > { %v1386_v58 = vpop.f32.mrf.mxu1 }
 0x397   : > { %v2203_v22 = vpop.f32.mrf.mxu1 }
 0x399   : > { %v1665_v60 = vpop.f32.mrf.mxu1 }
 0x39b   : > { %v2361_v56 = vpop.eup %2360  ;;  %v2204_v1 = vpop.f32.mrf.mxu1 }
 0x39d   : > { %v1668_v8 = vpop.f32.mrf.mxu1 }
 0x39f   : > { %v2363_v57 = vpop.eup %2362  ;;  %v2207_v11 = vpop.f32.mrf.mxu1 }
 0x3a0   : > { %v1975_v59 = vpack.c.bf16 %v2363_v57, %v2361_v56 }
 0x3a1   : > { %v1681_v12 = vpop.f32.mrf.mxu1 }
 0x3a2   : > { %1976 = vst [vmem:[#allocation3 + $0x28] sm:$0xff] %v1975_v59  }
 0x3a3   : > { %v2208_v17 = vpop.f32.mrf.mxu1 }
 0x3a5   : > { %v1684_v26 = vpop.f32.mrf.mxu1 }
 0x3a7   : > { %v2179_v61 = vpop.f32.mrf.mxu0 }
 0x3a8   : > { %v1513_v53 = vadd.f32 %v2179_v61, %v2155_v38 }
 0x3a9   : > { %v1714_v62 = vld [vmem:[#allocation3 + $0x28] sm:$0xff]   ;;  %v1504_v24 = vpop.f32.mrf.mxu0 }
 0x3aa   : > { %1718 = vst [vmem:[#allocation3 + $0x8] sm:$0xff] %v1714_v62   ;;  %v1505_v63 = vadd.f32 %v1504_v24, %v1367_v40  ;;  %v2347_v0 = vld [vmem:[#allocation3 + $0x28] sm:$0xff]   ;;  %v1698_v4 = vadd.f32 %v2203_v22, %v1513_v53 }
 0x3ab   : > { %v2180_v2 = vpop.f32.mrf.mxu0  ;;  %2182 = vmatmul.mubr.bf16.gmra.mxu0 %v2347_v0 }
 0x3ac   : > { %v1696_v3 = vadd.f32 %v1665_v60, %v1505_v63  ;;  %v1516_v5 = vadd.f32 %v2180_v2, %v2156_v45  ;;  %1706 = vst [vmem:[%s2445_s30 + $0x10] sm:$0xff] %v1698_v4 }
 0x3ad   : > { %v1507_v6 = vpop.f32.mrf.mxu0 }
 0x3ae   : > { %1704 = vst [vmem:[%s2445_s30] sm:$0xff] %v1696_v3  ;;  %v1508_v7 = vadd.f32 %v1507_v6, %v1370_v51  ;;  %v1699_v10 = vadd.f32 %v2204_v1, %v1516_v5 }
 0x3b0   : > { %v1697_v9 = vadd.f32 %v1668_v8, %v1508_v7  ;;  %1707 = vst [vmem:[%s2445_s30 + $0x18] sm:$0xff] %v1699_v10 }
 0x3b2   : > { %1705 = vst [vmem:[%s2445_s30 + $0x8] sm:$0xff] %v1697_v9 }
 0x46b   : > { %v2183_v13 = vpop.f32.mrf.mxu0 }
 0x46c   : > { %v1529_v14 = vadd.f32 %v2183_v13, %v2159_v52 }
 0x46d   : > { %v1520_v15 = vpop.f32.mrf.mxu0 }
 0x46e   : > { %v1521_v16 = vadd.f32 %v1520_v15, %v1383_v54  ;;  %v1702_v20 = vadd.f32 %v2207_v11, %v1529_v14 }
 0x46f   : > { %v2184_v18 = vpop.f32.mrf.mxu0 }
 0x470   : > { %v1700_v19 = vadd.f32 %v1681_v12, %v1521_v16  ;;  %v1532_v21 = vadd.f32 %v2184_v18, %v2160_v55  ;;  %1710 = vst [vmem:[%s2445_s30 + $0x30] sm:$0xff] %v1702_v20 }
 0x471   : > { %v1523_v23 = vpop.f32.mrf.mxu0 }
 0x472   : > { %1708 = vst [vmem:[%s2445_s30 + $0x20] sm:$0xff] %v1700_v19  ;;  %v1524_v25 = vadd.f32 %v1523_v23, %v1386_v58  ;;  %v1703_v28 = vadd.f32 %v2208_v17, %v1532_v21 }
 0x474   : > { %v1701_v27 = vadd.f32 %v1684_v26, %v1524_v25  ;;  %1711 = vst [vmem:[%s2445_s30 + $0x38] sm:$0xff] %v1703_v28 }
 0x476   : > { %1709 = vst [vmem:[%s2445_s30 + $0x28] sm:$0xff] %v1701_v27 }
 0x477 PF: > { %s15_s20 = sadd.s32 1, %s2386_s20   ;;  %s2790_s18 = smov %s2382_s19 }
 0x478   : > { %p12_p6 = scmp.ge.s32.totalorder %s15_s20, 4   ;;  %s2791_s19 = smov %s2793_s21 }
 0x47a   :  { %14 = sbr.rel (!%p12_p6) target bundleno = 2 (0x2), region = 82 }

</bundles_post_ra>
